<compile_context>
chip_gen: v7x
topology: tpu7x:2x2x1
jax: 0.10.0
libtpu: 0.0.40
codegen_flags: <defaults>
</compile_context>

<pallas_src>
import jax
import jax.numpy as jnp
from jax.experimental import pallas as pl
from jax.experimental.pallas import tpu as pltpu


_TAPS = tuple((kh, kw) for kh in range(3) for kw in range(3))   # center = index 4


# ---------------------------------------------------------------------------
# Kernel
# ---------------------------------------------------------------------------
def _make_resblock_kernel(H, W):
    def kernel(x_ref, mask_ref, w1_ref, s1_ref, w2_ref, s2_ref, o_ref):
        """Fused ResBlock over the batch-merged lane axis.

        x_ref   : (C, L) f32      input (L = N*HW lanes); also the residual
        mask_ref: (8, L) f32      0/1 border masks for the 8 non-center taps
        w1_ref  : (9, C, C) bf16  conv1 taps with BN1 scale folded in
        s1_ref  : (C, 1) f32      BN1 shift
        w2_ref  : (9, C, C) bf16  conv2 taps with BN2 scale folded in
        s2_ref  : (C, 1) f32      BN2 shift
        o_ref   : (C, L) f32      output
        """
        x = x_ref[...]
        L = x.shape[1]

        def conv3x3(inp, w_ref):
            acc = None
            for t, (kh, kw) in enumerate(_TAPS):
                d = (kh - 1) * W + (kw - 1)              # flat source offset
                if d == 0:
                    rolled = inp
                else:
                    rolled = pltpu.roll(inp, shift=(-d) % L, axis=1)
                if t != 4:                               # center tap: no mask
                    m = t if t < 4 else t - 1
                    rolled = rolled * mask_ref[pl.ds(m, 1), :]
                tap = rolled.astype(jnp.bfloat16)
                part = jnp.dot(w_ref[t], tap,
                               preferred_element_type=jnp.float32)
                acc = part if acc is None else acc + part
            return acc

        out1 = jnp.maximum(conv3x3(x, w1_ref) + s1_ref[...], 0.0)
        out2 = jnp.maximum(conv3x3(out1, w2_ref) + s2_ref[...] + x, 0.0)
        o_ref[...] = out2.astype(o_ref.dtype)

    return kernel


# ---------------------------------------------------------------------------
# Wrapper
# ---------------------------------------------------------------------------
def _fold_bn(gamma, beta, mean, var, eps=1e-5):
    scale = gamma / jnp.sqrt(var + eps)
    shift = beta - mean * scale
    return scale.astype(jnp.float32), shift.astype(jnp.float32)


def _weight_taps(w_oihw, scale):
    # (Cout, Cin, 3, 3) -> (9, Cout, Cin) with BN scale folded over Cout, bf16.
    w = w_oihw * scale[:, None, None, None]
    cout, cin = w.shape[0], w.shape[1]
    return jnp.transpose(w, (2, 3, 0, 1)).reshape(9, cout, cin).astype(jnp.bfloat16)


def _border_masks(H, W, reps):
    # (8, reps*HW) 0/1 validity masks for the 8 non-center taps.
    pos = jnp.arange(H * W, dtype=jnp.int32)
    hh, ww = pos // W, pos % W
    rows = []
    for kh, kw in _TAPS:
        if (kh, kw) == (1, 1):
            continue
        valid = jnp.ones((H * W,), jnp.bool_)
        if kh == 0:
            valid = valid & (hh >= 1)
        if kh == 2:
            valid = valid & (hh <= H - 2)
        if kw == 0:
            valid = valid & (ww >= 1)
        if kw == 2:
            valid = valid & (ww <= W - 2)
        rows.append(valid)
    masks = jnp.stack(rows).astype(jnp.float32)           # (8, HW)
    return jnp.tile(masks, (1, reps))                      # (8, reps*HW)


def res_block_forward(x_nchw, params):
    """ResBlock forward (stride=1, downsample=Identity), eval-mode BN."""
    N, C, H, W = x_nchw.shape
    HW = H * W
    L = N * HW   # 512 for the test shape — a multiple of 128 (lane-dense)

    # Merge the batch into the lane axis: (N, C, H, W) -> (C, N*HW).
    x2d = jnp.transpose(x_nchw.reshape(N, C, HW), (1, 0, 2)).reshape(C, L)
    x2d = x2d.astype(jnp.float32)

    scale1, shift1 = _fold_bn(params["bn1_gamma"], params["bn1_beta"],
                              params["bn1_mean"], params["bn1_var"])
    scale2, shift2 = _fold_bn(params["bn2_gamma"], params["bn2_beta"],
                              params["bn2_mean"], params["bn2_var"])

    w1 = _weight_taps(params["w1"], scale1)
    w2 = _weight_taps(params["w2"], scale2)
    s1 = shift1[:, None]
    s2 = shift2[:, None]
    masks = _border_masks(H, W, N)

    out2d = pl.pallas_call(
        _make_resblock_kernel(H, W),
        out_shape=jax.ShapeDtypeStruct((C, L), jnp.float32),
        grid=(1,),
        in_specs=[
            pl.BlockSpec((C, L), lambda i: (0, 0)),
            pl.BlockSpec((8, L), lambda i: (0, 0)),
            pl.BlockSpec((9, C, C), lambda i: (0, 0, 0)),
            pl.BlockSpec((C, 1), lambda i: (0, 0)),
            pl.BlockSpec((9, C, C), lambda i: (0, 0, 0)),
            pl.BlockSpec((C, 1), lambda i: (0, 0)),
        ],
        out_specs=pl.BlockSpec((C, L), lambda i: (0, 0)),
        compiler_params=pltpu.CompilerParams(
            dimension_semantics=("arbitrary",)),
    )(x2d, masks, w1, s1, w2, s2)

    return out2d.reshape(C, N, HW).transpose(1, 0, 2).reshape(N, C, H, W)


# ---------------------------------------------------------------------------
# Plain-JAX reference (for a correctness check)
# ---------------------------------------------------------------------------
def _ref_forward(x_nchw, params):
    def conv(x, w_oihw):
        return jax.lax.conv_general_dilated(
            x, w_oihw, window_strides=(1, 1), padding="SAME",
            dimension_numbers=("NCHW", "OIHW", "NCHW"))

    def bn(x, g, b, m, v, eps=1e-5):
        g, b, m, v = (t[None, :, None, None] for t in (g, b, m, v))
        return (x - m) * g / jnp.sqrt(v + eps) + b

    out = jax.nn.relu(bn(conv(x_nchw, params["w1"]),
                         params["bn1_gamma"], params["bn1_beta"],
                         params["bn1_mean"], params["bn1_var"]))
    out = jax.nn.relu(x_nchw + bn(conv(out, params["w2"]),
                                  params["bn2_gamma"], params["bn2_beta"],
                                  params["bn2_mean"], params["bn2_var"]))
    return out


# ---------------------------------------------------------------------------
# Main
# ---------------------------------------------------------------------------
if __name__ == "__main__":
    N, C, H, W = 2, 4, 16, 16   # in_channel == out_channel, stride=1, Identity skip
    key = jax.random.PRNGKey(0)
    k_x, k_w1, k_w2, k_g1, k_b1, k_m1, k_g2, k_b2, k_m2 = jax.random.split(key, 9)

    x = jax.random.normal(k_x, (N, C, H, W), jnp.float32)

    # Conv weights in PyTorch (Cout, Cin, KH, KW) layout; no bias (bias=False).
    params = {
        "w1": jax.random.normal(k_w1, (C, C, 3, 3), jnp.float32) * 0.1,
        "w2": jax.random.normal(k_w2, (C, C, 3, 3), jnp.float32) * 0.1,
        "bn1_gamma": 1.0 + 0.1 * jax.random.normal(k_g1, (C,), jnp.float32),
        "bn1_beta": 0.1 * jax.random.normal(k_b1, (C,), jnp.float32),
        "bn1_mean": 0.05 * jax.random.normal(k_m1, (C,), jnp.float32),
        "bn1_var": jnp.ones((C,), jnp.float32),
        "bn2_gamma": 1.0 + 0.1 * jax.random.normal(k_g2, (C,), jnp.float32),
        "bn2_beta": 0.1 * jax.random.normal(k_b2, (C,), jnp.float32),
        "bn2_mean": 0.05 * jax.random.normal(k_m2, (C,), jnp.float32),
        "bn2_var": jnp.ones((C,), jnp.float32),
    }

    out = jax.jit(res_block_forward)(x, params)
    out = jax.block_until_ready(out)

    ref = _ref_forward(x, params)
    assert out.shape == (N, C, H, W)
    # Tolerance loosened vs. the pure-f32 version: weights/taps feed the MXU
    # in bf16 (accumulation is f32), per the performance review.
    assert jnp.allclose(out, ref, atol=5e-2, rtol=5e-2), "mismatch vs JAX reference"

    print("KERNEL_OK")
</pallas_src>

<mosaic_0001>
module attributes {stable_mosaic.version = 11 : i64} {
  func.func @kernel(%arg0: i32, %arg1: memref<4x512xf32, #tpu.memory_space<vmem>>, %arg2: memref<8x512xf32, #tpu.memory_space<vmem>>, %arg3: memref<9x4x4xbf16, #tpu.memory_space<vmem>>, %arg4: memref<4x1xf32, #tpu.memory_space<vmem>>, %arg5: memref<9x4x4xbf16, #tpu.memory_space<vmem>>, %arg6: memref<4x1xf32, #tpu.memory_space<vmem>>, %arg7: memref<4x512xf32, #tpu.memory_space<vmem>>) attributes {dimension_semantics = [#tpu.dimension_semantics<arbitrary>], iteration_bounds = array<i64: 1>, scalar_prefetch = 0 : i64, scratch_operands = 0 : i64, tpu.core_type = #tpu.core_type<tc>, window_params = [{pipeline_mode = #tpu.pipeline_mode<synchronous>, transform_indices = @transform_0, window_bounds = array<i64: 4, 512>}, {pipeline_mode = #tpu.pipeline_mode<synchronous>, transform_indices = @transform_1, window_bounds = array<i64: 8, 512>}, {pipeline_mode = #tpu.pipeline_mode<synchronous>, transform_indices = @transform_2, window_bounds = array<i64: 9, 4, 4>}, {pipeline_mode = #tpu.pipeline_mode<synchronous>, transform_indices = @transform_3, window_bounds = array<i64: 4, 1>}, {pipeline_mode = #tpu.pipeline_mode<synchronous>, transform_indices = @transform_4, window_bounds = array<i64: 9, 4, 4>}, {pipeline_mode = #tpu.pipeline_mode<synchronous>, transform_indices = @transform_5, window_bounds = array<i64: 4, 1>}, {pipeline_mode = #tpu.pipeline_mode<synchronous>, transform_indices = @transform_6, window_bounds = array<i64: 4, 512>}]} {
    %c0 = arith.constant 0 : index
    %c0_0 = arith.constant 0 : index
    %0 = vector.load %arg1[%c0, %c0_0] : memref<4x512xf32, #tpu.memory_space<vmem>>, vector<4x512xf32>
    %c17_i32 = arith.constant 17 : i32
    %1 = tpu.dynamic_rotate %0 by %c17_i32 dim 1 : vector<4x512xf32>, i32 -> vector<4x512xf32>
    %c0_1 = arith.constant 0 : index
    %c0_2 = arith.constant 0 : index
    %2 = vector.load %arg2[%c0_1, %c0_2] : memref<8x512xf32, #tpu.memory_space<vmem>>, vector<1x512xf32>
    %3 = vector.broadcast %2 : vector<1x512xf32> to vector<4x512xf32>
    %4 = arith.mulf %1, %3 : vector<4x512xf32>
    %5 = arith.truncf %4 : vector<4x512xf32> to vector<4x512xbf16>
    %c0_3 = arith.constant 0 : index
    %c0_4 = arith.constant 0 : index
    %c0_5 = arith.constant 0 : index
    %6 = vector.load %arg3[%c0_3, %c0_4, %c0_5] : memref<9x4x4xbf16, #tpu.memory_space<vmem>>, vector<1x4x4xbf16>
    %7 = vector.shape_cast %6 : vector<1x4x4xbf16> to vector<4x4xbf16>
    %cst = arith.constant dense<0.000000e+00> : vector<4x512xf32>
    %8 = tpu.matmul %7, %5, %cst {dimension_numbers = #tpu.dot_dimension_numbers<[1], [0], [0], [1], [0, 0, 1, 1], [], []>} : vector<4x4xbf16>, vector<4x512xbf16>, vector<4x512xf32> -> vector<4x512xf32>
    %c16_i32 = arith.constant 16 : i32
    %9 = tpu.dynamic_rotate %0 by %c16_i32 dim 1 : vector<4x512xf32>, i32 -> vector<4x512xf32>
    %c1 = arith.constant 1 : index
    %c0_6 = arith.constant 0 : index
    %10 = vector.load %arg2[%c1, %c0_6] : memref<8x512xf32, #tpu.memory_space<vmem>>, vector<1x512xf32>
    %11 = vector.broadcast %10 : vector<1x512xf32> to vector<4x512xf32>
    %12 = arith.mulf %9, %11 : vector<4x512xf32>
    %13 = arith.truncf %12 : vector<4x512xf32> to vector<4x512xbf16>
    %c1_7 = arith.constant 1 : index
    %c0_8 = arith.constant 0 : index
    %c0_9 = arith.constant 0 : index
    %14 = vector.load %arg3[%c1_7, %c0_8, %c0_9] : memref<9x4x4xbf16, #tpu.memory_space<vmem>>, vector<1x4x4xbf16>
    %15 = vector.shape_cast %14 : vector<1x4x4xbf16> to vector<4x4xbf16>
    %cst_10 = arith.constant dense<0.000000e+00> : vector<4x512xf32>
    %16 = tpu.matmul %15, %13, %cst_10 {dimension_numbers = #tpu.dot_dimension_numbers<[1], [0], [0], [1], [0, 0, 1, 1], [], []>} : vector<4x4xbf16>, vector<4x512xbf16>, vector<4x512xf32> -> vector<4x512xf32>
    %17 = arith.addf %8, %16 : vector<4x512xf32>
    %c15_i32 = arith.constant 15 : i32
    %18 = tpu.dynamic_rotate %0 by %c15_i32 dim 1 : vector<4x512xf32>, i32 -> vector<4x512xf32>
    %c2 = arith.constant 2 : index
    %c0_11 = arith.constant 0 : index
    %19 = vector.load %arg2[%c2, %c0_11] : memref<8x512xf32, #tpu.memory_space<vmem>>, vector<1x512xf32>
    %20 = vector.broadcast %19 : vector<1x512xf32> to vector<4x512xf32>
    %21 = arith.mulf %18, %20 : vector<4x512xf32>
    %22 = arith.truncf %21 : vector<4x512xf32> to vector<4x512xbf16>
    %c2_12 = arith.constant 2 : index
    %c0_13 = arith.constant 0 : index
    %c0_14 = arith.constant 0 : index
    %23 = vector.load %arg3[%c2_12, %c0_13, %c0_14] : memref<9x4x4xbf16, #tpu.memory_space<vmem>>, vector<1x4x4xbf16>
    %24 = vector.shape_cast %23 : vector<1x4x4xbf16> to vector<4x4xbf16>
    %cst_15 = arith.constant dense<0.000000e+00> : vector<4x512xf32>
    %25 = tpu.matmul %24, %22, %cst_15 {dimension_numbers = #tpu.dot_dimension_numbers<[1], [0], [0], [1], [0, 0, 1, 1], [], []>} : vector<4x4xbf16>, vector<4x512xbf16>, vector<4x512xf32> -> vector<4x512xf32>
    %26 = arith.addf %17, %25 : vector<4x512xf32>
    %c1_i32 = arith.constant 1 : i32
    %27 = tpu.dynamic_rotate %0 by %c1_i32 dim 1 : vector<4x512xf32>, i32 -> vector<4x512xf32>
    %c3 = arith.constant 3 : index
    %c0_16 = arith.constant 0 : index
    %28 = vector.load %arg2[%c3, %c0_16] : memref<8x512xf32, #tpu.memory_space<vmem>>, vector<1x512xf32>
    %29 = vector.broadcast %28 : vector<1x512xf32> to vector<4x512xf32>
    %30 = arith.mulf %27, %29 : vector<4x512xf32>
    %31 = arith.truncf %30 : vector<4x512xf32> to vector<4x512xbf16>
    %c3_17 = arith.constant 3 : index
    %c0_18 = arith.constant 0 : index
    %c0_19 = arith.constant 0 : index
    %32 = vector.load %arg3[%c3_17, %c0_18, %c0_19] : memref<9x4x4xbf16, #tpu.memory_space<vmem>>, vector<1x4x4xbf16>
    %33 = vector.shape_cast %32 : vector<1x4x4xbf16> to vector<4x4xbf16>
    %cst_20 = arith.constant dense<0.000000e+00> : vector<4x512xf32>
    %34 = tpu.matmul %33, %31, %cst_20 {dimension_numbers = #tpu.dot_dimension_numbers<[1], [0], [0], [1], [0, 0, 1, 1], [], []>} : vector<4x4xbf16>, vector<4x512xbf16>, vector<4x512xf32> -> vector<4x512xf32>
    %35 = arith.addf %26, %34 : vector<4x512xf32>
    %36 = arith.truncf %0 : vector<4x512xf32> to vector<4x512xbf16>
    %c4 = arith.constant 4 : index
    %c0_21 = arith.constant 0 : index
    %c0_22 = arith.constant 0 : index
    %37 = vector.load %arg3[%c4, %c0_21, %c0_22] : memref<9x4x4xbf16, #tpu.memory_space<vmem>>, vector<1x4x4xbf16>
    %38 = vector.shape_cast %37 : vector<1x4x4xbf16> to vector<4x4xbf16>
    %cst_23 = arith.constant dense<0.000000e+00> : vector<4x512xf32>
    %39 = tpu.matmul %38, %36, %cst_23 {dimension_numbers = #tpu.dot_dimension_numbers<[1], [0], [0], [1], [0, 0, 1, 1], [], []>} : vector<4x4xbf16>, vector<4x512xbf16>, vector<4x512xf32> -> vector<4x512xf32>
    %40 = arith.addf %35, %39 : vector<4x512xf32>
    %c511_i32 = arith.constant 511 : i32
    %41 = tpu.dynamic_rotate %0 by %c511_i32 dim 1 : vector<4x512xf32>, i32 -> vector<4x512xf32>
    %c4_24 = arith.constant 4 : index
    %c0_25 = arith.constant 0 : index
    %42 = vector.load %arg2[%c4_24, %c0_25] : memref<8x512xf32, #tpu.memory_space<vmem>>, vector<1x512xf32>
    %43 = vector.broadcast %42 : vector<1x512xf32> to vector<4x512xf32>
    %44 = arith.mulf %41, %43 : vector<4x512xf32>
    %45 = arith.truncf %44 : vector<4x512xf32> to vector<4x512xbf16>
    %c5 = arith.constant 5 : index
    %c0_26 = arith.constant 0 : index
    %c0_27 = arith.constant 0 : index
    %46 = vector.load %arg3[%c5, %c0_26, %c0_27] : memref<9x4x4xbf16, #tpu.memory_space<vmem>>, vector<1x4x4xbf16>
    %47 = vector.shape_cast %46 : vector<1x4x4xbf16> to vector<4x4xbf16>
    %cst_28 = arith.constant dense<0.000000e+00> : vector<4x512xf32>
    %48 = tpu.matmul %47, %45, %cst_28 {dimension_numbers = #tpu.dot_dimension_numbers<[1], [0], [0], [1], [0, 0, 1, 1], [], []>} : vector<4x4xbf16>, vector<4x512xbf16>, vector<4x512xf32> -> vector<4x512xf32>
    %49 = arith.addf %40, %48 : vector<4x512xf32>
    %c497_i32 = arith.constant 497 : i32
    %50 = tpu.dynamic_rotate %0 by %c497_i32 dim 1 : vector<4x512xf32>, i32 -> vector<4x512xf32>
    %c5_29 = arith.constant 5 : index
    %c0_30 = arith.constant 0 : index
    %51 = vector.load %arg2[%c5_29, %c0_30] : memref<8x512xf32, #tpu.memory_space<vmem>>, vector<1x512xf32>
    %52 = vector.broadcast %51 : vector<1x512xf32> to vector<4x512xf32>
    %53 = arith.mulf %50, %52 : vector<4x512xf32>
    %54 = arith.truncf %53 : vector<4x512xf32> to vector<4x512xbf16>
    %c6 = arith.constant 6 : index
    %c0_31 = arith.constant 0 : index
    %c0_32 = arith.constant 0 : index
    %55 = vector.load %arg3[%c6, %c0_31, %c0_32] : memref<9x4x4xbf16, #tpu.memory_space<vmem>>, vector<1x4x4xbf16>
    %56 = vector.shape_cast %55 : vector<1x4x4xbf16> to vector<4x4xbf16>
    %cst_33 = arith.constant dense<0.000000e+00> : vector<4x512xf32>
    %57 = tpu.matmul %56, %54, %cst_33 {dimension_numbers = #tpu.dot_dimension_numbers<[1], [0], [0], [1], [0, 0, 1, 1], [], []>} : vector<4x4xbf16>, vector<4x512xbf16>, vector<4x512xf32> -> vector<4x512xf32>
    %58 = arith.addf %49, %57 : vector<4x512xf32>
    %c496_i32 = arith.constant 496 : i32
    %59 = tpu.dynamic_rotate %0 by %c496_i32 dim 1 : vector<4x512xf32>, i32 -> vector<4x512xf32>
    %c6_34 = arith.constant 6 : index
    %c0_35 = arith.constant 0 : index
    %60 = vector.load %arg2[%c6_34, %c0_35] : memref<8x512xf32, #tpu.memory_space<vmem>>, vector<1x512xf32>
    %61 = vector.broadcast %60 : vector<1x512xf32> to vector<4x512xf32>
    %62 = arith.mulf %59, %61 : vector<4x512xf32>
    %63 = arith.truncf %62 : vector<4x512xf32> to vector<4x512xbf16>
    %c7 = arith.constant 7 : index
    %c0_36 = arith.constant 0 : index
    %c0_37 = arith.constant 0 : index
    %64 = vector.load %arg3[%c7, %c0_36, %c0_37] : memref<9x4x4xbf16, #tpu.memory_space<vmem>>, vector<1x4x4xbf16>
    %65 = vector.shape_cast %64 : vector<1x4x4xbf16> to vector<4x4xbf16>
    %cst_38 = arith.constant dense<0.000000e+00> : vector<4x512xf32>
    %66 = tpu.matmul %65, %63, %cst_38 {dimension_numbers = #tpu.dot_dimension_numbers<[1], [0], [0], [1], [0, 0, 1, 1], [], []>} : vector<4x4xbf16>, vector<4x512xbf16>, vector<4x512xf32> -> vector<4x512xf32>
    %67 = arith.addf %58, %66 : vector<4x512xf32>
    %c495_i32 = arith.constant 495 : i32
    %68 = tpu.dynamic_rotate %0 by %c495_i32 dim 1 : vector<4x512xf32>, i32 -> vector<4x512xf32>
    %c7_39 = arith.constant 7 : index
    %c0_40 = arith.constant 0 : index
    %69 = vector.load %arg2[%c7_39, %c0_40] : memref<8x512xf32, #tpu.memory_space<vmem>>, vector<1x512xf32>
    %70 = vector.broadcast %69 : vector<1x512xf32> to vector<4x512xf32>
    %71 = arith.mulf %68, %70 : vector<4x512xf32>
    %72 = arith.truncf %71 : vector<4x512xf32> to vector<4x512xbf16>
    %c8 = arith.constant 8 : index
    %c0_41 = arith.constant 0 : index
    %c0_42 = arith.constant 0 : index
    %73 = vector.load %arg3[%c8, %c0_41, %c0_42] : memref<9x4x4xbf16, #tpu.memory_space<vmem>>, vector<1x4x4xbf16>
    %74 = vector.shape_cast %73 : vector<1x4x4xbf16> to vector<4x4xbf16>
    %cst_43 = arith.constant dense<0.000000e+00> : vector<4x512xf32>
    %75 = tpu.matmul %74, %72, %cst_43 {dimension_numbers = #tpu.dot_dimension_numbers<[1], [0], [0], [1], [0, 0, 1, 1], [], []>} : vector<4x4xbf16>, vector<4x512xbf16>, vector<4x512xf32> -> vector<4x512xf32>
    %76 = arith.addf %67, %75 : vector<4x512xf32>
    %c0_44 = arith.constant 0 : index
    %c0_45 = arith.constant 0 : index
    %77 = vector.load %arg4[%c0_44, %c0_45] : memref<4x1xf32, #tpu.memory_space<vmem>>, vector<4x1xf32>
    %78 = vector.broadcast %77 : vector<4x1xf32> to vector<4x512xf32>
    %79 = arith.addf %76, %78 : vector<4x512xf32>
    %cst_46 = arith.constant 0.000000e+00 : f32
    %80 = vector.broadcast %cst_46 : f32 to vector<4x512xf32>
    %81 = arith.maximumf %79, %80 : vector<4x512xf32>
    %c17_i32_47 = arith.constant 17 : i32
    %82 = tpu.dynamic_rotate %81 by %c17_i32_47 dim 1 : vector<4x512xf32>, i32 -> vector<4x512xf32>
    %c0_48 = arith.constant 0 : index
    %c0_49 = arith.constant 0 : index
    %83 = vector.load %arg2[%c0_48, %c0_49] : memref<8x512xf32, #tpu.memory_space<vmem>>, vector<1x512xf32>
    %84 = vector.broadcast %83 : vector<1x512xf32> to vector<4x512xf32>
    %85 = arith.mulf %82, %84 : vector<4x512xf32>
    %86 = arith.truncf %85 : vector<4x512xf32> to vector<4x512xbf16>
    %c0_50 = arith.constant 0 : index
    %c0_51 = arith.constant 0 : index
    %c0_52 = arith.constant 0 : index
    %87 = vector.load %arg5[%c0_50, %c0_51, %c0_52] : memref<9x4x4xbf16, #tpu.memory_space<vmem>>, vector<1x4x4xbf16>
    %88 = vector.shape_cast %87 : vector<1x4x4xbf16> to vector<4x4xbf16>
    %cst_53 = arith.constant dense<0.000000e+00> : vector<4x512xf32>
    %89 = tpu.matmul %88, %86, %cst_53 {dimension_numbers = #tpu.dot_dimension_numbers<[1], [0], [0], [1], [0, 0, 1, 1], [], []>} : vector<4x4xbf16>, vector<4x512xbf16>, vector<4x512xf32> -> vector<4x512xf32>
    %c16_i32_54 = arith.constant 16 : i32
    %90 = tpu.dynamic_rotate %81 by %c16_i32_54 dim 1 : vector<4x512xf32>, i32 -> vector<4x512xf32>
    %c1_55 = arith.constant 1 : index
    %c0_56 = arith.constant 0 : index
    %91 = vector.load %arg2[%c1_55, %c0_56] : memref<8x512xf32, #tpu.memory_space<vmem>>, vector<1x512xf32>
    %92 = vector.broadcast %91 : vector<1x512xf32> to vector<4x512xf32>
    %93 = arith.mulf %90, %92 : vector<4x512xf32>
    %94 = arith.truncf %93 : vector<4x512xf32> to vector<4x512xbf16>
    %c1_57 = arith.constant 1 : index
    %c0_58 = arith.constant 0 : index
    %c0_59 = arith.constant 0 : index
    %95 = vector.load %arg5[%c1_57, %c0_58, %c0_59] : memref<9x4x4xbf16, #tpu.memory_space<vmem>>, vector<1x4x4xbf16>
    %96 = vector.shape_cast %95 : vector<1x4x4xbf16> to vector<4x4xbf16>
    %cst_60 = arith.constant dense<0.000000e+00> : vector<4x512xf32>
    %97 = tpu.matmul %96, %94, %cst_60 {dimension_numbers = #tpu.dot_dimension_numbers<[1], [0], [0], [1], [0, 0, 1, 1], [], []>} : vector<4x4xbf16>, vector<4x512xbf16>, vector<4x512xf32> -> vector<4x512xf32>
    %98 = arith.addf %89, %97 : vector<4x512xf32>
    %c15_i32_61 = arith.constant 15 : i32
    %99 = tpu.dynamic_rotate %81 by %c15_i32_61 dim 1 : vector<4x512xf32>, i32 -> vector<4x512xf32>
    %c2_62 = arith.constant 2 : index
    %c0_63 = arith.constant 0 : index
    %100 = vector.load %arg2[%c2_62, %c0_63] : memref<8x512xf32, #tpu.memory_space<vmem>>, vector<1x512xf32>
    %101 = vector.broadcast %100 : vector<1x512xf32> to vector<4x512xf32>
    %102 = arith.mulf %99, %101 : vector<4x512xf32>
    %103 = arith.truncf %102 : vector<4x512xf32> to vector<4x512xbf16>
    %c2_64 = arith.constant 2 : index
    %c0_65 = arith.constant 0 : index
    %c0_66 = arith.constant 0 : index
    %104 = vector.load %arg5[%c2_64, %c0_65, %c0_66] : memref<9x4x4xbf16, #tpu.memory_space<vmem>>, vector<1x4x4xbf16>
    %105 = vector.shape_cast %104 : vector<1x4x4xbf16> to vector<4x4xbf16>
    %cst_67 = arith.constant dense<0.000000e+00> : vector<4x512xf32>
    %106 = tpu.matmul %105, %103, %cst_67 {dimension_numbers = #tpu.dot_dimension_numbers<[1], [0], [0], [1], [0, 0, 1, 1], [], []>} : vector<4x4xbf16>, vector<4x512xbf16>, vector<4x512xf32> -> vector<4x512xf32>
    %107 = arith.addf %98, %106 : vector<4x512xf32>
    %c1_i32_68 = arith.constant 1 : i32
    %108 = tpu.dynamic_rotate %81 by %c1_i32_68 dim 1 : vector<4x512xf32>, i32 -> vector<4x512xf32>
    %c3_69 = arith.constant 3 : index
    %c0_70 = arith.constant 0 : index
    %109 = vector.load %arg2[%c3_69, %c0_70] : memref<8x512xf32, #tpu.memory_space<vmem>>, vector<1x512xf32>
    %110 = vector.broadcast %109 : vector<1x512xf32> to vector<4x512xf32>
    %111 = arith.mulf %108, %110 : vector<4x512xf32>
    %112 = arith.truncf %111 : vector<4x512xf32> to vector<4x512xbf16>
    %c3_71 = arith.constant 3 : index
    %c0_72 = arith.constant 0 : index
    %c0_73 = arith.constant 0 : index
    %113 = vector.load %arg5[%c3_71, %c0_72, %c0_73] : memref<9x4x4xbf16, #tpu.memory_space<vmem>>, vector<1x4x4xbf16>
    %114 = vector.shape_cast %113 : vector<1x4x4xbf16> to vector<4x4xbf16>
    %cst_74 = arith.constant dense<0.000000e+00> : vector<4x512xf32>
    %115 = tpu.matmul %114, %112, %cst_74 {dimension_numbers = #tpu.dot_dimension_numbers<[1], [0], [0], [1], [0, 0, 1, 1], [], []>} : vector<4x4xbf16>, vector<4x512xbf16>, vector<4x512xf32> -> vector<4x512xf32>
    %116 = arith.addf %107, %115 : vector<4x512xf32>
    %117 = arith.truncf %81 : vector<4x512xf32> to vector<4x512xbf16>
    %c4_75 = arith.constant 4 : index
    %c0_76 = arith.constant 0 : index
    %c0_77 = arith.constant 0 : index
    %118 = vector.load %arg5[%c4_75, %c0_76, %c0_77] : memref<9x4x4xbf16, #tpu.memory_space<vmem>>, vector<1x4x4xbf16>
    %119 = vector.shape_cast %118 : vector<1x4x4xbf16> to vector<4x4xbf16>
    %cst_78 = arith.constant dense<0.000000e+00> : vector<4x512xf32>
    %120 = tpu.matmul %119, %117, %cst_78 {dimension_numbers = #tpu.dot_dimension_numbers<[1], [0], [0], [1], [0, 0, 1, 1], [], []>} : vector<4x4xbf16>, vector<4x512xbf16>, vector<4x512xf32> -> vector<4x512xf32>
    %121 = arith.addf %116, %120 : vector<4x512xf32>
    %c511_i32_79 = arith.constant 511 : i32
    %122 = tpu.dynamic_rotate %81 by %c511_i32_79 dim 1 : vector<4x512xf32>, i32 -> vector<4x512xf32>
    %c4_80 = arith.constant 4 : index
    %c0_81 = arith.constant 0 : index
    %123 = vector.load %arg2[%c4_80, %c0_81] : memref<8x512xf32, #tpu.memory_space<vmem>>, vector<1x512xf32>
    %124 = vector.broadcast %123 : vector<1x512xf32> to vector<4x512xf32>
    %125 = arith.mulf %122, %124 : vector<4x512xf32>
    %126 = arith.truncf %125 : vector<4x512xf32> to vector<4x512xbf16>
    %c5_82 = arith.constant 5 : index
    %c0_83 = arith.constant 0 : index
    %c0_84 = arith.constant 0 : index
    %127 = vector.load %arg5[%c5_82, %c0_83, %c0_84] : memref<9x4x4xbf16, #tpu.memory_space<vmem>>, vector<1x4x4xbf16>
    %128 = vector.shape_cast %127 : vector<1x4x4xbf16> to vector<4x4xbf16>
    %cst_85 = arith.constant dense<0.000000e+00> : vector<4x512xf32>
    %129 = tpu.matmul %128, %126, %cst_85 {dimension_numbers = #tpu.dot_dimension_numbers<[1], [0], [0], [1], [0, 0, 1, 1], [], []>} : vector<4x4xbf16>, vector<4x512xbf16>, vector<4x512xf32> -> vector<4x512xf32>
    %130 = arith.addf %121, %129 : vector<4x512xf32>
    %c497_i32_86 = arith.constant 497 : i32
    %131 = tpu.dynamic_rotate %81 by %c497_i32_86 dim 1 : vector<4x512xf32>, i32 -> vector<4x512xf32>
    %c5_87 = arith.constant 5 : index
    %c0_88 = arith.constant 0 : index
    %132 = vector.load %arg2[%c5_87, %c0_88] : memref<8x512xf32, #tpu.memory_space<vmem>>, vector<1x512xf32>
    %133 = vector.broadcast %132 : vector<1x512xf32> to vector<4x512xf32>
    %134 = arith.mulf %131, %133 : vector<4x512xf32>
    %135 = arith.truncf %134 : vector<4x512xf32> to vector<4x512xbf16>
    %c6_89 = arith.constant 6 : index
    %c0_90 = arith.constant 0 : index
    %c0_91 = arith.constant 0 : index
    %136 = vector.load %arg5[%c6_89, %c0_90, %c0_91] : memref<9x4x4xbf16, #tpu.memory_space<vmem>>, vector<1x4x4xbf16>
    %137 = vector.shape_cast %136 : vector<1x4x4xbf16> to vector<4x4xbf16>
    %cst_92 = arith.constant dense<0.000000e+00> : vector<4x512xf32>
    %138 = tpu.matmul %137, %135, %cst_92 {dimension_numbers = #tpu.dot_dimension_numbers<[1], [0], [0], [1], [0, 0, 1, 1], [], []>} : vector<4x4xbf16>, vector<4x512xbf16>, vector<4x512xf32> -> vector<4x512xf32>
    %139 = arith.addf %130, %138 : vector<4x512xf32>
    %c496_i32_93 = arith.constant 496 : i32
    %140 = tpu.dynamic_rotate %81 by %c496_i32_93 dim 1 : vector<4x512xf32>, i32 -> vector<4x512xf32>
    %c6_94 = arith.constant 6 : index
    %c0_95 = arith.constant 0 : index
    %141 = vector.load %arg2[%c6_94, %c0_95] : memref<8x512xf32, #tpu.memory_space<vmem>>, vector<1x512xf32>
    %142 = vector.broadcast %141 : vector<1x512xf32> to vector<4x512xf32>
    %143 = arith.mulf %140, %142 : vector<4x512xf32>
    %144 = arith.truncf %143 : vector<4x512xf32> to vector<4x512xbf16>
    %c7_96 = arith.constant 7 : index
    %c0_97 = arith.constant 0 : index
    %c0_98 = arith.constant 0 : index
    %145 = vector.load %arg5[%c7_96, %c0_97, %c0_98] : memref<9x4x4xbf16, #tpu.memory_space<vmem>>, vector<1x4x4xbf16>
    %146 = vector.shape_cast %145 : vector<1x4x4xbf16> to vector<4x4xbf16>
    %cst_99 = arith.constant dense<0.000000e+00> : vector<4x512xf32>
    %147 = tpu.matmul %146, %144, %cst_99 {dimension_numbers = #tpu.dot_dimension_numbers<[1], [0], [0], [1], [0, 0, 1, 1], [], []>} : vector<4x4xbf16>, vector<4x512xbf16>, vector<4x512xf32> -> vector<4x512xf32>
    %148 = arith.addf %139, %147 : vector<4x512xf32>
    %c495_i32_100 = arith.constant 495 : i32
    %149 = tpu.dynamic_rotate %81 by %c495_i32_100 dim 1 : vector<4x512xf32>, i32 -> vector<4x512xf32>
    %c7_101 = arith.constant 7 : index
    %c0_102 = arith.constant 0 : index
    %150 = vector.load %arg2[%c7_101, %c0_102] : memref<8x512xf32, #tpu.memory_space<vmem>>, vector<1x512xf32>
    %151 = vector.broadcast %150 : vector<1x512xf32> to vector<4x512xf32>
    %152 = arith.mulf %149, %151 : vector<4x512xf32>
    %153 = arith.truncf %152 : vector<4x512xf32> to vector<4x512xbf16>
    %c8_103 = arith.constant 8 : index
    %c0_104 = arith.constant 0 : index
    %c0_105 = arith.constant 0 : index
    %154 = vector.load %arg5[%c8_103, %c0_104, %c0_105] : memref<9x4x4xbf16, #tpu.memory_space<vmem>>, vector<1x4x4xbf16>
    %155 = vector.shape_cast %154 : vector<1x4x4xbf16> to vector<4x4xbf16>
    %cst_106 = arith.constant dense<0.000000e+00> : vector<4x512xf32>
    %156 = tpu.matmul %155, %153, %cst_106 {dimension_numbers = #tpu.dot_dimension_numbers<[1], [0], [0], [1], [0, 0, 1, 1], [], []>} : vector<4x4xbf16>, vector<4x512xbf16>, vector<4x512xf32> -> vector<4x512xf32>
    %157 = arith.addf %148, %156 : vector<4x512xf32>
    %c0_107 = arith.constant 0 : index
    %c0_108 = arith.constant 0 : index
    %158 = vector.load %arg6[%c0_107, %c0_108] : memref<4x1xf32, #tpu.memory_space<vmem>>, vector<4x1xf32>
    %159 = vector.broadcast %158 : vector<4x1xf32> to vector<4x512xf32>
    %160 = arith.addf %157, %159 : vector<4x512xf32>
    %161 = arith.addf %160, %0 : vector<4x512xf32>
    %cst_109 = arith.constant 0.000000e+00 : f32
    %162 = vector.broadcast %cst_109 : f32 to vector<4x512xf32>
    %163 = arith.maximumf %161, %162 : vector<4x512xf32>
    %c0_110 = arith.constant 0 : index
    %c0_111 = arith.constant 0 : index
    %164 = vector.load %arg7[%c0_110, %c0_111] : memref<4x512xf32, #tpu.memory_space<vmem>>, vector<4x512xf32>
    tpu.vector_store %arg7[%c0_110, %c0_111], %163 {strides = array<i32>} : memref<4x512xf32, #tpu.memory_space<vmem>>, vector<4x512xf32>,
    return
  }
  func.func @transform_0(%arg0: i32) -> (i32, i32) {
    %c0_i32 = arith.constant 0 : i32
    %c0_i32_0 = arith.constant 0 : i32
    %c0_i32_1 = arith.constant 0 : i32
    return %c0_i32, %c0_i32_0 : i32, i32
  }
  func.func @transform_1(%arg0: i32) -> (i32, i32) {
    %c0_i32 = arith.constant 0 : i32
    %c0_i32_0 = arith.constant 0 : i32
    %c0_i32_1 = arith.constant 0 : i32
    return %c0_i32, %c0_i32_0 : i32, i32
  }
  func.func @transform_2(%arg0: i32) -> (i32, i32, i32) {
    %c0_i32 = arith.constant 0 : i32
    %c0_i32_0 = arith.constant 0 : i32
    %c0_i32_1 = arith.constant 0 : i32
    %c0_i32_2 = arith.constant 0 : i32
    return %c0_i32, %c0_i32_0, %c0_i32_1 : i32, i32, i32
  }
  func.func @transform_3(%arg0: i32) -> (i32, i32) {
    %c0_i32 = arith.constant 0 : i32
    %c0_i32_0 = arith.constant 0 : i32
    %c0_i32_1 = arith.constant 0 : i32
    return %c0_i32, %c0_i32_0 : i32, i32
  }
  func.func @transform_4(%arg0: i32) -> (i32, i32, i32) {
    %c0_i32 = arith.constant 0 : i32
    %c0_i32_0 = arith.constant 0 : i32
    %c0_i32_1 = arith.constant 0 : i32
    %c0_i32_2 = arith.constant 0 : i32
    return %c0_i32, %c0_i32_0, %c0_i32_1 : i32, i32, i32
  }
  func.func @transform_5(%arg0: i32) -> (i32, i32) {
    %c0_i32 = arith.constant 0 : i32
    %c0_i32_0 = arith.constant 0 : i32
    %c0_i32_1 = arith.constant 0 : i32
    return %c0_i32, %c0_i32_0 : i32, i32
  }
  func.func @transform_6(%arg0: i32) -> (i32, i32) {
    %c0_i32 = arith.constant 0 : i32
    %c0_i32_0 = arith.constant 0 : i32
    %c0_i32_1 = arith.constant 0 : i32
    return %c0_i32, %c0_i32_0 : i32, i32
  }
}

</mosaic_0001>

<bundles_post_ra>
// kernel: res_block_forward.1
= control target key start
LH: loop header
LB: loop body
LE: loop exit
PB: predicated region body
PF: predicated region fallthrough
CT: control target
= control target key end

     0   :  { %v2546_v2 = vmov 0   ;;  %s2547_s25 = smov 16   ;;  %s2548_s26 = smov 17   ;;  %v40_v6 = vlaneseq  ;;  %vm128_vm2 = vcmask 1041408   ;;  %vm124_vm3 = vcmask 31744   ;;  %s3309_s0 = inlined_call_operand.vmem [shape: f32[4,512], index: 0, kind: input, shape index: {}]   ;;  %s3310_s3 = inlined_call_operand.vmem [shape: f32[4,1], index: 3, kind: input, shape index: {}]   ;;  %s3311_s1 = inlined_call_operand.vmem [shape: f32[8,512], index: 1, kind: input, shape index: {}]   ;;  %s3312_s2 = inlined_call_operand.vmem [shape: bf16[9,4,4], index: 2, kind: input, shape index: {}]   ;;  %s3313_s5 = inlined_call_operand.vmem [shape: f32[4,1], index: 5, kind: input, shape index: {}]   ;;  %s3314_s4 = inlined_call_operand.vmem [shape: bf16[9,4,4], index: 4, kind: input, shape index: {}]   ;;  %s3315_s6 = inlined_call_operand.vmem [shape: f32[4,512], index: 6, kind: output, shape index: {}]  }
   0x1   :  { %v2593_v0 = vld [vmem:[%s3309_s0 + $0x8] sm:$0xff]  ;;  %v2598_v1 = vld [vmem:[%s3309_s0] sm:$0xff]  ;;  %173 = vmatprep.mubr.bf16.mxu0 %v2546_v2  ;;  %214 = vmatprep.mubr.bf16.mxu1 %v2546_v2  ;;  %s2549_s27 = smov 15   ;;  %s2550_s28 = smov 1  }
   0x2   :  { %82 = vrot.lane.b32.xlu1 %v2593_v0, %s2547_s25  ;;  %78 = vrot.lane.b32.xlu0 %v2598_v1, %s2547_s25  ;;  %v2608_v3 = vcombine.high %v2593_v0, %v2593_v0  ;;  %v2612_v4 = vcombine.high %v2598_v1, %v2598_v1  ;;  %s2551_s29 = smov 127   ;;  %s2552_s30 = smov 113   ;;  %v1309_v5 = vld [vmem:[%s3310_s3] sm:$0xf]  ;;  %v50_v7 = vshrl.u32 %v40_v6, 7  ;;  %v2678_v8 = vand.u32 127, %v40_v6 }
   0x3   :  { %2541 = vset.pattern.permute.xlu0 %v2546_v2  ;;  %s2553_s7 = smov 112   ;;  %s2554_s8 = smov 111   ;;  %v2437_v13 = vld [vmem:[%s3311_s1 + $0x1] ss:$8 sm:$0xf] }
   0x4   :  { %v2680_v9 = vsub.s32 0, %v50_v7  ;;  %v2682_v10 = vsub.s32 2, %v50_v7  ;;  %v2684_v11 = vsub.s32 1, %v50_v7  ;;  %v2686_v12 = vsub.s32 3, %v50_v7  ;;  %v2438_v46 = vld [vmem:[%s3312_s2 + $0x2] sm:$0x3] }
   0x5   :  { %vm86_vm0 = vcmp.lt.s32.totalorder %v2678_v8, 16  ;;  %v47_v16 = vld [vmem:[%s3311_s1] ss:$8 sm:$0xf]  ;;  %vm42_vm1 = vcmp.lt.s32.totalorder %v2678_v8, 17  ;;  %vm328_vm4 = vcmp.lt.s32.totalorder %v2678_v8, 15 }
   0x6   :  { %84 = vrot.lane.b32.xlu1 %v2608_v3, %s2547_s25  ;;  %80 = vrot.lane.b32.xlu0 %v2612_v4, %s2547_s25  ;;  %v2696_v17 = vrot.slane %v2437_v13, %v2680_v9  ;;  %v2699_v18 = vrot.slane %v2437_v13, %v2682_v10  ;;  %v2702_v19 = vrot.slane %v2437_v13, %v2684_v11  ;;  %v2447_v45 = vld [vmem:[%s3311_s1 + $0x2] ss:$8 sm:$0xf]  ;;  %vm475_vm5 = vcmp.lt.s32.totalorder %v2678_v8, 1 }
   0x7   :  { %v2705_v20 = vrot.slane %v2437_v13, %v2686_v12  ;;  %v2709_v23 = vrot.slane %v47_v16, %v2684_v11  ;;  %v2726_v39 = vrot.slane %v47_v16, %v2680_v9  ;;  %v2729_v40 = vrot.slane %v47_v16, %v2682_v10 }
   0x8   :  { %v2737_v44 = vrot.slane %v47_v16, %v2686_v12  ;;  %v2752_v53 = vrot.slane %v2447_v45, %v2684_v11  ;;  %v2766_v63 = vrot.slane %v2447_v45, %v2680_v9  ;;  %v77_v16 = vld [vmem:[%s3312_s2] sm:$0x3]  ;;  %vm729_vm6 = vcmp.lt.s32.totalorder %v2678_v8, 127 }
   0x9   :  { %vm876_vm7 = vcmp.lt.s32.totalorder %v2678_v8, 113  ;;  %vm1023_vm8 = vcmp.lt.s32.totalorder %v2678_v8, 112  ;;  %vm1170_vm9 = vcmp.lt.s32.totalorder %v2678_v8, 111 }
   0xa   :  { %34 = vrot.lane.b32.xlu1 %v2612_v4, %s2548_s26  ;;  %32 = vrot.lane.b32.xlu0 %v2598_v1, %s2548_s26 }
   0xe   :  { %38 = vrot.lane.b32.xlu1 %v2608_v3, %s2548_s26  ;;  %36 = vrot.lane.b32.xlu0 %v2593_v0, %s2548_s26 }
  0x12   :  { %322 = vrot.lane.b32.xlu1 %v2612_v4, %s2549_s27  ;;  %320 = vrot.lane.b32.xlu0 %v2598_v1, %s2549_s27 }
  0x16   :  { %326 = vrot.lane.b32.xlu1 %v2608_v3, %s2549_s27  ;;  %324 = vrot.lane.b32.xlu0 %v2593_v0, %s2549_s27 }
  0x1a   :  { %469 = vrot.lane.b32.xlu1 %v2612_v4, %s2550_s28  ;;  %467 = vrot.lane.b32.xlu0 %v2598_v1, %s2550_s28 }
  0x1e   :  { %473 = vrot.lane.b32.xlu1 %v2608_v3, %s2550_s28  ;;  %471 = vrot.lane.b32.xlu0 %v2593_v0, %s2550_s28 }
  0x22   :  { %723 = vrot.lane.b32.xlu1 %v2612_v4, %s2551_s29  ;;  %721 = vrot.lane.b32.xlu0 %v2598_v1, %s2551_s29 }
  0x26   :  { %727 = vrot.lane.b32.xlu1 %v2608_v3, %s2551_s29  ;;  %725 = vrot.lane.b32.xlu0 %v2593_v0, %s2551_s29 }
  0x2a   :  { %870 = vrot.lane.b32.xlu1 %v2612_v4, %s2552_s30  ;;  %868 = vrot.lane.b32.xlu0 %v2598_v1, %s2552_s30 }
  0x2e   :  { %874 = vrot.lane.b32.xlu1 %v2608_v3, %s2552_s30  ;;  %872 = vrot.lane.b32.xlu0 %v2593_v0, %s2552_s30 }
  0x32   :  { %1017 = vrot.lane.b32.xlu1 %v2612_v4, %s2553_s7  ;;  %1015 = vrot.lane.b32.xlu0 %v2598_v1, %s2553_s7 }
  0x36   :  { %1021 = vrot.lane.b32.xlu1 %v2608_v3, %s2553_s7  ;;  %1019 = vrot.lane.b32.xlu0 %v2593_v0, %s2553_s7 }
  0x3a   :  { %1164 = vrot.lane.b32.xlu1 %v2612_v4, %s2554_s8  ;;  %1162 = vrot.lane.b32.xlu0 %v2598_v1, %s2554_s8 }
  0x3e   :  { %1168 = vrot.lane.b32.xlu1 %v2608_v3, %s2554_s8  ;;  %1166 = vrot.lane.b32.xlu0 %v2593_v0, %s2554_s8 }
  0x42   :  { %1312 = vperm.xlu0 %2541, %v1309_v5   ;;  %v2769_v5 = vrot.slane %v2447_v45, %v2682_v10 }
  0x74   :  { %v83_v14 = vpop.permute.xlu1 %82  ;;  %v79_v15 = vpop.permute.xlu0 %78 }
  0x78   :  { %v85_v21 = vpop.permute.xlu1 %84  ;;  %v81_v22 = vpop.permute.xlu0 %80 }
  0x79   :  { %v87_v24 = vsel %vm86_vm0, %v83_v14, %v85_v21  ;;  %v90_v25 = vsel %vm86_vm0, %v85_v21, %v79_v15  ;;  %v88_v26 = vsel %vm86_vm0, %v81_v22, %v83_v14  ;;  %v89_v27 = vsel %vm86_vm0, %v79_v15, %v81_v22  ;;  %v2453_v15 = vld [vmem:[%s3311_s1 + $0x3] ss:$8 sm:$0xf] }
  0x7a   :  { %v114_v28 = vmul.f32 %v2696_v17, %v90_v25  ;;  %v116_v29 = vmul.f32 %v2699_v18, %v88_v26  ;;  %v115_v30 = vmul.f32 %v2702_v19, %v89_v27  ;;  %v117_v31 = vmul.f32 %v2705_v20, %v87_v24 }
  0x7b   :  { %v2776_v14 = vrot.slane %v2447_v45, %v2686_v12 }
  0x7c   :  { %v35_v32 = vpop.permute.xlu1 %34  ;;  %v33_v33 = vpop.permute.xlu0 %32  ;;  %v119_v34 = vpack.c.bf16 %v115_v30, %v115_v30  ;;  %v121_v35 = vpack.c.bf16 %v117_v31, %v117_v31  ;;  %v118_v36 = vpack.c.bf16 %v114_v28, %v114_v28  ;;  %v120_v37 = vpack.c.bf16 %v116_v29, %v116_v29 }
  0x7d   :  { %v45_v38 = vsel %vm42_vm1, %v33_v33, %v35_v32  ;;  %v2791_v28 = vrot.slane %v2453_v15, %v2684_v11 }
  0x7e   :  { %v70_v41 = vmul.f32 %v2709_v23, %v45_v38  ;;  %2439 = vmatprep.subr.msk.bf16.mxu0 %vm128_vm2, %v119_v34  ;;  %2441 = vmatprep.subr.msk.bf16.mxu1 %vm128_vm2, %v121_v35  ;;  %v130_v42 = vsel %vm128_vm2, %v118_v36, 0  ;;  %v136_v43 = vsel %vm128_vm2, %v120_v37, 0  ;;  %v2805_v38 = vrot.slane %v2453_v15, %v2680_v9 }
  0x7f   :  { %142 = vmatpush1.bf16.msra.mxu0 %v130_v42  ;;  %183 = vmatpush1.bf16.msra.mxu1 %v136_v43 }
  0x80   :  { %v74_v47 = vpack.c.bf16 %v70_v41, %v70_v41  ;;  %v39_v48 = vpop.permute.xlu1 %38  ;;  %v37_v49 = vpop.permute.xlu0 %36  ;;  %v2808_v41 = vrot.slane %v2453_v15, %v2682_v10 }
  0x81   :  { %v46_v50 = vsel %vm42_vm1, %v39_v48, %v33_v33  ;;  %v43_v51 = vsel %vm42_vm1, %v37_v49, %v39_v48  ;;  %v44_v52 = vsel %vm42_vm1, %v35_v32, %v37_v49  ;;  %v2448_v48 = vld [vmem:[%s3312_s2 + $0x4] sm:$0x3] }
  0x82   :  { %v69_v54 = vmul.f32 %v2726_v39, %v46_v50  ;;  %v71_v55 = vmul.f32 %v2729_v40, %v44_v52  ;;  %v72_v56 = vmul.f32 %v2737_v44, %v43_v51  ;;  %2440 = vmatmul.mubr.msk.bf16.vlgmr.msra.gmra.mrb[0].mxu0 %vm124_vm3, %v2438_v46  ;;  %2442 = vmatmul.mubr.msk.bf16.vlgmr.msra.gmra.mrb[0].mxu1 %vm124_vm3, %v2438_v46 }
  0x83   :  { %2443 = vmatprep.subr.msk.bf16.mxu0 %vm128_vm2, %v74_v47  ;;  %270 = vmatprep.mubr.bf16.mxu0 %v2546_v2  ;;  %v2815_v46 = vrot.slane %v2453_v15, %v2686_v12  ;;  %v2464_v47 = vld [vmem:[%s3311_s1 + $0x4] ss:$8 sm:$0xf] }
  0x84   :  { %v73_v57 = vpack.c.bf16 %v69_v54, %v69_v54  ;;  %v75_v58 = vpack.c.bf16 %v71_v55, %v71_v55  ;;  %v76_v59 = vpack.c.bf16 %v72_v56, %v72_v56  ;;  %v323_v60 = vpop.permute.xlu1 %322  ;;  %v321_v61 = vpop.permute.xlu0 %320  ;;  %311 = vmatprep.mubr.bf16.mxu1 %v2546_v2  ;;  %v2830_v56 = vrot.slane %v2464_v47, %v2680_v9 }
  0x85   :  { %v331_v62 = vsel %vm328_vm4, %v321_v61, %v323_v60 }
  0x86   :  { %v357_v6 = vmul.f32 %v2752_v53, %v331_v62  ;;  %2445 = vmatprep.subr.msk.bf16.mxu1 %vm128_vm2, %v76_v59  ;;  %v227_v7 = vsel %vm128_vm2, %v73_v57, 0  ;;  %v233_v13 = vsel %vm128_vm2, %v75_v58, 0  ;;  %v614_v62 = vpack.c.bf16 %v2598_v1, %v2598_v1 }
  0x87   :  { %239 = vmatpush1.bf16.msra.mxu0 %v227_v7  ;;  %280 = vmatpush1.bf16.msra.mxu1 %v233_v13 }
  0x88   :  { %v361_v21 = vpack.c.bf16 %v357_v6, %v357_v6  ;;  %v327_v22 = vpop.permute.xlu1 %326  ;;  %v325_v24 = vpop.permute.xlu0 %324 }
  0x89   :  { %v332_v25 = vsel %vm328_vm4, %v327_v22, %v321_v61  ;;  %v329_v26 = vsel %vm328_vm4, %v325_v24, %v327_v22  ;;  %v330_v27 = vsel %vm328_vm4, %v323_v60, %v325_v24  ;;  %v615_v60 = vpack.c.bf16 %v2612_v4, %v2612_v4 }
  0x8a   :  { %v356_v29 = vmul.f32 %v2766_v63, %v332_v25  ;;  %v358_v30 = vmul.f32 %v2769_v5, %v330_v27  ;;  %v359_v31 = vmul.f32 %v2776_v14, %v329_v26  ;;  %2444 = vmatmul.mubr.msk.bf16.vlgmr.msra.gmra.mrb[4].mxu0 %vm124_vm3, %v77_v16  ;;  %2446 = vmatmul.mubr.msk.bf16.vlgmr.msra.gmra.mrb[4].mxu1 %vm124_vm3, %v77_v16 }
  0x8b   :  { %2449 = vmatprep.subr.msk.bf16.mxu0 %vm128_vm2, %v361_v21  ;;  %413 = vmatprep.mubr.bf16.mxu0 %v2546_v2  ;;  %v617_v61 = vpack.c.bf16 %v2608_v3, %v2608_v3  ;;  %v616_v21 = vpack.c.bf16 %v2593_v0, %v2593_v0  ;;  %v2852_v24 = vrot.slane %v2464_v47, %v2686_v12 }
  0x8c   :  { %v360_v32 = vpack.c.bf16 %v356_v29, %v356_v29  ;;  %v362_v33 = vpack.c.bf16 %v358_v30, %v358_v30  ;;  %v363_v34 = vpack.c.bf16 %v359_v31, %v359_v31  ;;  %v470_v35 = vpop.permute.xlu1 %469  ;;  %v468_v36 = vpop.permute.xlu0 %467  ;;  %454 = vmatprep.mubr.bf16.mxu1 %v2546_v2  ;;  %v2858_v26 = vrot.slane %v2464_v47, %v2684_v11  ;;  %v2454_v29 = vld [vmem:[%s3312_s2 + $0x6] sm:$0x3] }
  0x8d   :  { %v478_v37 = vsel %vm475_vm5, %v468_v36, %v470_v35  ;;  %v2861_v27 = vrot.slane %v2464_v47, %v2682_v10 }
  0x8e   :  { %v504_v42 = vmul.f32 %v2791_v28, %v478_v37  ;;  %2451 = vmatprep.subr.msk.bf16.mxu1 %vm128_vm2, %v363_v34  ;;  %v370_v43 = vsel %vm128_vm2, %v360_v32, 0  ;;  %v376_v45 = vsel %vm128_vm2, %v362_v33, 0  ;;  %v624_v32 = vsel %vm128_vm2, %v614_v62, 0  ;;  %v2470_v34 = vld [vmem:[%s3311_s1 + $0x5] ss:$8 sm:$0xf] }
  0x8f   :  { %382 = vmatpush1.bf16.msra.mxu0 %v370_v43  ;;  %423 = vmatpush1.bf16.msra.mxu1 %v376_v45  ;;  %v630_v33 = vsel %vm128_vm2, %v616_v21, 0 }
  0x90   :  { %v508_v49 = vpack.c.bf16 %v504_v42, %v504_v42  ;;  %v474_v50 = vpop.permute.xlu1 %473  ;;  %v472_v51 = vpop.permute.xlu0 %471 }
  0x91   :  { %v479_v52 = vsel %vm475_vm5, %v474_v50, %v468_v36  ;;  %v476_v54 = vsel %vm475_vm5, %v472_v51, %v474_v50  ;;  %v477_v55 = vsel %vm475_vm5, %v470_v35, %v472_v51 }
  0x92   :  { %v503_v57 = vmul.f32 %v2805_v38, %v479_v52  ;;  %v505_v58 = vmul.f32 %v2808_v41, %v477_v55  ;;  %v506_v59 = vmul.f32 %v2815_v46, %v476_v54  ;;  %2450 = vmatmul.mubr.msk.bf16.vlgmr.msra.gmra.mrb[8].mxu0 %vm124_vm3, %v2448_v48  ;;  %2452 = vmatmul.mubr.msk.bf16.vlgmr.msra.gmra.mrb[8].mxu1 %vm124_vm3, %v2448_v48 }
  0x93   :  { %2455 = vmatprep.subr.msk.bf16.mxu0 %vm128_vm2, %v508_v49  ;;  %560 = vmatprep.mubr.bf16.mxu0 %v2546_v2  ;;  %v2887_v48 = vrot.slane %v2470_v34, %v2680_v9 }
  0x94   :  { %v507_v6 = vpack.c.bf16 %v503_v57, %v503_v57  ;;  %v509_v7 = vpack.c.bf16 %v505_v58, %v505_v58  ;;  %v510_v13 = vpack.c.bf16 %v506_v59, %v506_v59  ;;  %v724_v15 = vpop.permute.xlu1 %723  ;;  %v722_v16 = vpop.permute.xlu0 %721  ;;  %601 = vmatprep.mubr.bf16.mxu1 %v2546_v2  ;;  %v2896_v57 = vrot.slane %v2470_v34, %v2686_v12 }
  0x95   :  { %v732_v22 = vsel %vm729_vm6, %v722_v16, %v724_v15  ;;  %v2899_v58 = vrot.slane %v2470_v34, %v2684_v11  ;;  %v2902_v59 = vrot.slane %v2470_v34, %v2682_v10 }
  0x96   :  { %2457 = vmatprep.subr.msk.bf16.mxu1 %vm128_vm2, %v510_v13  ;;  %v517_v1 = vsel %vm128_vm2, %v507_v6, 0  ;;  %v523_v25 = vsel %vm128_vm2, %v509_v7, 0  ;;  %v757_v0 = vmul.f32 %v2830_v56, %v732_v22 }
  0x97   :  { %529 = vmatpush1.bf16.msra.mxu0 %v517_v1  ;;  %570 = vmatpush1.bf16.msra.mxu1 %v523_v25 }
  0x98   :  { %v728_v30 = vpop.permute.xlu1 %727  ;;  %v726_v31 = vpop.permute.xlu0 %725  ;;  %2460 = vmatprep.subr.msk.bf16.mxu0 %vm128_vm2, %v615_v60  ;;  %2462 = vmatprep.subr.msk.bf16.mxu1 %vm128_vm2, %v617_v61  ;;  %v761_v47 = vpack.c.bf16 %v757_v0, %v757_v0  ;;  %v2459_v61 = vld [vmem:[%s3312_s2 + $0x8] sm:$0x3] }
  0x99   :  { %v733_v35 = vsel %vm729_vm6, %v728_v30, %v722_v16  ;;  %v730_v36 = vsel %vm729_vm6, %v726_v31, %v728_v30  ;;  %v731_v37 = vsel %vm729_vm6, %v724_v15, %v726_v31  ;;  %v2476_v15 = vld [vmem:[%s3311_s1 + $0x6] ss:$8 sm:$0xf] }
  0x9a   :  { %2456 = vmatmul.mubr.msk.bf16.vlgmr.msra.gmra.mrb[12].mxu0 %vm124_vm3, %v2454_v29  ;;  %2458 = vmatmul.mubr.msk.bf16.vlgmr.msra.gmra.mrb[12].mxu1 %vm124_vm3, %v2454_v29  ;;  %v760_v42 = vmul.f32 %v2852_v24, %v733_v35  ;;  %v758_v43 = vmul.f32 %v2858_v26, %v731_v37  ;;  %v759_v45 = vmul.f32 %v2861_v27, %v730_v36  ;;  %v771_v62 = vsel %vm128_vm2, %v761_v47, 0  ;;  %v2465_v47 = vld [vmem:[%s3312_s2 + $0xa] sm:$0x3] }
  0x9b   :  { %636 = vmatpush1.bf16.msra.mxu0 %v624_v32  ;;  %677 = vmatpush1.bf16.msra.mxu1 %v630_v33  ;;  %v2926_v30 = vrot.slane %v2476_v15, %v2680_v9  ;;  %v2935_v37 = vrot.slane %v2476_v15, %v2686_v12 }
  0x9c   :  { %v764_v49 = vpack.c.bf16 %v760_v42, %v760_v42  ;;  %v762_v50 = vpack.c.bf16 %v758_v43, %v758_v43  ;;  %v763_v51 = vpack.c.bf16 %v759_v45, %v759_v45  ;;  %v871_v52 = vpop.permute.xlu1 %870  ;;  %v869_v54 = vpop.permute.xlu0 %868  ;;  %667 = vmatprep.mubr.bf16.mxu0 %v2546_v2  ;;  %708 = vmatprep.mubr.bf16.mxu1 %v2546_v2 }
  0x9d   :  { %v879_v55 = vsel %vm876_vm7, %v869_v54, %v871_v52  ;;  %v2938_v42 = vrot.slane %v2476_v15, %v2684_v11  ;;  %v2941_v43 = vrot.slane %v2476_v15, %v2682_v10 }
  0x9e   :  { %2466 = vmatprep.subr.msk.bf16.mxu0 %vm128_vm2, %v762_v50  ;;  %2468 = vmatprep.subr.msk.bf16.mxu1 %vm128_vm2, %v764_v49  ;;  %v904_v60 = vmul.f32 %v2887_v48, %v879_v55  ;;  %v777_v13 = vsel %vm128_vm2, %v763_v51, 0 }
  0xa0   :  { %v875_v6 = vpop.permute.xlu1 %874  ;;  %v873_v7 = vpop.permute.xlu0 %872  ;;  %v908_v29 = vpack.c.bf16 %v904_v60, %v904_v60 }
  0xa1   :  { %v880_v16 = vsel %vm876_vm7, %v875_v6, %v869_v54  ;;  %v877_v21 = vsel %vm876_vm7, %v873_v7, %v875_v6  ;;  %v878_v22 = vsel %vm876_vm7, %v871_v52, %v873_v7  ;;  %v2482_v54 = vld [vmem:[%s3311_s1 + $0x7] ss:$8 sm:$0xf] }
  0xa2   :  { %2461 = vmatmul.mubr.msk.bf16.vlgmr.msra.gmra.mrb[16].mxu0 %vm124_vm3, %v2459_v61  ;;  %2463 = vmatmul.mubr.msk.bf16.vlgmr.msra.gmra.mrb[16].mxu1 %vm124_vm3, %v2459_v61  ;;  %v907_v1 = vmul.f32 %v2896_v57, %v880_v16  ;;  %v905_v25 = vmul.f32 %v2899_v58, %v878_v22  ;;  %v906_v0 = vmul.f32 %v2902_v59, %v877_v21  ;;  %v918_v49 = vsel %vm128_vm2, %v908_v29, 0 }
  0xa3   :  { %783 = vmatpush1.bf16.msra.mxu0 %v771_v62  ;;  %824 = vmatpush1.bf16.msra.mxu1 %v777_v13  ;;  %v2965_v15 = vrot.slane %v2482_v54, %v2680_v9  ;;  %v2974_v29 = vrot.slane %v2482_v54, %v2686_v12  ;;  %v2977_v9 = vrot.slane %v2482_v54, %v2684_v11 }
  0xa4   :  { %v911_v31 = vpack.c.bf16 %v907_v1, %v907_v1  ;;  %v909_v32 = vpack.c.bf16 %v905_v25, %v905_v25  ;;  %v910_v33 = vpack.c.bf16 %v906_v0, %v906_v0  ;;  %v1018_v34 = vpop.permute.xlu1 %1017  ;;  %v1016_v35 = vpop.permute.xlu0 %1015  ;;  %814 = vmatprep.mubr.bf16.mxu0 %v2546_v2  ;;  %855 = vmatprep.mubr.bf16.mxu1 %v2546_v2 }
  0xa5   :  { %v1026_v36 = vsel %vm1023_vm8, %v1016_v35, %v1018_v34 }
  0xa6   :  { %2472 = vmatprep.subr.msk.bf16.mxu0 %vm128_vm2, %v909_v32  ;;  %2474 = vmatprep.subr.msk.bf16.mxu1 %vm128_vm2, %v911_v31  ;;  %v1051_v45 = vmul.f32 %v2926_v30, %v1026_v36  ;;  %v924_v52 = vsel %vm128_vm2, %v910_v33, 0  ;;  %v2980_v31 = vrot.slane %v2482_v54, %v2682_v10  ;;  %v2471_v33 = vld [vmem:[%s3312_s2 + $0xc] sm:$0x3] }
  0xa8   :  { %v1022_v50 = vpop.permute.xlu1 %1021  ;;  %v1020_v51 = vpop.permute.xlu0 %1019  ;;  %v1055_v13 = vpack.c.bf16 %v1051_v45, %v1051_v45 }
  0xa9   :  { %v1027_v55 = vsel %vm1023_vm8, %v1022_v50, %v1016_v35  ;;  %v1024_v60 = vsel %vm1023_vm8, %v1020_v51, %v1022_v50  ;;  %v1025_v61 = vsel %vm1023_vm8, %v1018_v34, %v1020_v51 }
  0xaa   :  { %2467 = vmatmul.mubr.msk.bf16.vlgmr.msra.gmra.mrb[20].mxu0 %vm124_vm3, %v2465_v47  ;;  %2469 = vmatmul.mubr.msk.bf16.vlgmr.msra.gmra.mrb[20].mxu1 %vm124_vm3, %v2465_v47  ;;  %v1054_v62 = vmul.f32 %v2935_v37, %v1027_v55  ;;  %v1052_v6 = vmul.f32 %v2938_v42, %v1025_v61  ;;  %v1053_v7 = vmul.f32 %v2941_v43, %v1024_v60  ;;  %v1065_v34 = vsel %vm128_vm2, %v1055_v13, 0  ;;  %v2477_v60 = vld [vmem:[%s3312_s2 + $0xe] sm:$0x3] }
  0xab   :  { %930 = vmatpush1.bf16.msra.mxu0 %v918_v49  ;;  %971 = vmatpush1.bf16.msra.mxu1 %v924_v52 }
  0xac   :  { %v1058_v16 = vpack.c.bf16 %v1054_v62, %v1054_v62  ;;  %v1056_v21 = vpack.c.bf16 %v1052_v6, %v1052_v6  ;;  %v1057_v22 = vpack.c.bf16 %v1053_v7, %v1053_v7  ;;  %v1165_v1 = vpop.permute.xlu1 %1164  ;;  %v1163_v25 = vpop.permute.xlu0 %1162  ;;  %961 = vmatprep.mubr.bf16.mxu0 %v2546_v2  ;;  %1002 = vmatprep.mubr.bf16.mxu1 %v2546_v2  ;;  %v2483_v6 = vld [vmem:[%s3312_s2 + $0x10] sm:$0x3] }
  0xad   :  { %v1173_v0 = vsel %vm1170_vm9, %v1163_v25, %v1165_v1 }
  0xae   :  { %2478 = vmatprep.subr.msk.bf16.mxu0 %vm128_vm2, %v1056_v21  ;;  %2480 = vmatprep.subr.msk.bf16.mxu1 %vm128_vm2, %v1058_v16  ;;  %v1198_v32 = vmul.f32 %v2965_v15, %v1173_v0  ;;  %v1071_v45 = vsel %vm128_vm2, %v1057_v22, 0 }
  0xb0   :  { %v1169_v35 = vpop.permute.xlu1 %1168  ;;  %v1167_v36 = vpop.permute.xlu0 %1166  ;;  %v1202_v51 = vpack.c.bf16 %v1198_v32, %v1198_v32 }
  0xb1   :  { %v1174_v12 = vsel %vm1170_vm9, %v1169_v35, %v1163_v25  ;;  %v1171_v11 = vsel %vm1170_vm9, %v1167_v36, %v1169_v35  ;;  %v1172_v10 = vsel %vm1170_vm9, %v1165_v1, %v1167_v36 }
  0xb2   :  { %2473 = vmatmul.mubr.msk.bf16.vlgmr.msra.gmra.mrb[24].mxu0 %vm124_vm3, %v2471_v33  ;;  %2475 = vmatmul.mubr.msk.bf16.vlgmr.msra.gmra.mrb[24].mxu1 %vm124_vm3, %v2471_v33  ;;  %v1201_v47 = vmul.f32 %v2974_v29, %v1174_v12  ;;  %v1199_v49 = vmul.f32 %v2977_v9, %v1172_v10  ;;  %v1200_v50 = vmul.f32 %v2980_v31, %v1171_v11  ;;  %v1212_v61 = vsel %vm128_vm2, %v1202_v51, 0 }
  0xb3   :  { %1077 = vmatpush1.bf16.msra.mxu0 %v1065_v34  ;;  %1118 = vmatpush1.bf16.msra.mxu1 %v1071_v45 }
  0xb4   :  { %v1205_v52 = vpack.c.bf16 %v1201_v47, %v1201_v47  ;;  %v1203_v54 = vpack.c.bf16 %v1199_v49, %v1199_v49  ;;  %v1204_v55 = vpack.c.bf16 %v1200_v50, %v1200_v50  ;;  %1108 = vmatprep.mubr.bf16.mxu0 %v2546_v2  ;;  %1149 = vmatprep.mubr.bf16.mxu1 %v2546_v2 }
  0xb6   :  { %2484 = vmatprep.subr.msk.bf16.mxu0 %vm128_vm2, %v1203_v54  ;;  %2486 = vmatprep.subr.msk.bf16.mxu1 %vm128_vm2, %v1205_v52  ;;  %v1218_v62 = vsel %vm128_vm2, %v1204_v55, 0 }
  0xba   :  { %2479 = vmatmul.mubr.msk.bf16.vlgmr.msra.gmra.mrb[28].mxu0 %vm124_vm3, %v2477_v60  ;;  %2481 = vmatmul.mubr.msk.bf16.vlgmr.msra.gmra.mrb[28].mxu1 %vm124_vm3, %v2477_v60 }
  0xbb   :  { %1224 = vmatpush1.bf16.msra.mxu0 %v1212_v61  ;;  %1265 = vmatpush1.bf16.msra.mxu1 %v1218_v62 }
  0xbc   :  { %1255 = vmatprep.mubr.bf16.mxu0 %v2546_v2  ;;  %1296 = vmatprep.mubr.bf16.mxu1 %v2546_v2 }
  0xc2   :  { %2485 = vmatmul.mubr.msk.bf16.vlgmr.msra.gmra.mrb[32].mxu0 %vm124_vm3, %v2483_v6  ;;  %2487 = vmatmul.mubr.msk.bf16.vlgmr.msra.gmra.mrb[32].mxu1 %vm124_vm3, %v2483_v6 }
  0xc3   :  { %1413 = vmatprep.mubr.bf16.mxu0 %v2546_v2  ;;  %1454 = vmatprep.mubr.bf16.mxu1 %v2546_v2 }
 0x155   :  { %v175_v7 = vpop.f32.mrb[0].mxu0  ;;  %v216_v13 = vpop.f32.mrb[0].mxu1 }
 0x156   :  { %v177_v16 = vpop.f32.mrb[1].mxu0  ;;  %v218_v21 = vpop.f32.mrb[1].mxu1 }
 0x157   :  { %v179_v22 = vpop.f32.mrb[2].mxu0  ;;  %v220_v1 = vpop.f32.mrb[2].mxu1 }
 0x158   :  { %v180_v25 = vpop.f32.mrb[3].mxu0  ;;  %v221_v0 = vpop.f32.mrb[3].mxu1 }
 0x15d   :  { %v272_v32 = vpop.f32.mrb[4].mxu0  ;;  %v313_v33 = vpop.f32.mrb[4].mxu1 }
 0x15e   :  { %v273_v34 = vadd.f32 %v272_v32, %v175_v7  ;;  %v314_v35 = vadd.f32 %v313_v33, %v216_v13  ;;  %v274_v36 = vpop.f32.mrb[5].mxu0  ;;  %v315_v45 = vpop.f32.mrb[5].mxu1 }
 0x15f   :  { %v275_v12 = vadd.f32 %v274_v36, %v177_v16  ;;  %v316_v11 = vadd.f32 %v315_v45, %v218_v21  ;;  %v276_v10 = vpop.f32.mrb[6].mxu0  ;;  %v317_v47 = vpop.f32.mrb[6].mxu1 }
 0x160   :  { %v277_v49 = vpop.f32.mrb[7].mxu0  ;;  %v318_v50 = vpop.f32.mrb[7].mxu1 }
 0x165   :  { %v415_v51 = vpop.f32.mrb[8].mxu0  ;;  %v456_v52 = vpop.f32.mrb[8].mxu1 }
 0x166   :  { %v463_v54 = vadd.f32 %v415_v51, %v273_v34  ;;  %v465_v55 = vadd.f32 %v456_v52, %v314_v35  ;;  %v417_v60 = vpop.f32.mrb[9].mxu0  ;;  %v458_v61 = vpop.f32.mrb[9].mxu1 }
 0x167   :  { %v464_v62 = vadd.f32 %v417_v60, %v275_v12  ;;  %v466_v6 = vadd.f32 %v458_v61, %v316_v11  ;;  %v419_v22 = vpop.f32.mrb[10].mxu0  ;;  %v460_v1 = vpop.f32.mrb[10].mxu1 }
 0x168   :  { %v420_v7 = vpop.f32.mrb[11].mxu0  ;;  %v461_v13 = vpop.f32.mrb[11].mxu1 }
 0x16d   :  { %v562_v25 = vpop.f32.mrb[12].mxu0  ;;  %v603_v0 = vpop.f32.mrb[12].mxu1 }
 0x16e   :  { %v610_v16 = vadd.f32 %v562_v25, %v463_v54  ;;  %v612_v21 = vadd.f32 %v603_v0, %v465_v55  ;;  %v564_v32 = vpop.f32.mrb[13].mxu0  ;;  %v605_v33 = vpop.f32.mrb[13].mxu1 }
 0x16f   :  { %v611_v36 = vadd.f32 %v564_v32, %v464_v62  ;;  %v613_v45 = vadd.f32 %v605_v33, %v466_v6  ;;  %v566_v10 = vpop.f32.mrb[14].mxu0  ;;  %v607_v47 = vpop.f32.mrb[14].mxu1 }
 0x170   :  { %v567_v34 = vpop.f32.mrb[15].mxu0  ;;  %v608_v35 = vpop.f32.mrb[15].mxu1 }
 0x175   :  { %v669_v49 = vpop.f32.mrb[16].mxu0  ;;  %v710_v50 = vpop.f32.mrb[16].mxu1 }
 0x176   :  { %v717_v12 = vadd.f32 %v669_v49, %v610_v16  ;;  %v719_v11 = vadd.f32 %v710_v50, %v612_v21  ;;  %v671_v51 = vpop.f32.mrb[17].mxu0  ;;  %v712_v52 = vpop.f32.mrb[17].mxu1 }
 0x177   :  { %v718_v60 = vadd.f32 %v671_v51, %v611_v36  ;;  %v720_v61 = vadd.f32 %v712_v52, %v613_v45  ;;  %v673_v22 = vpop.f32.mrb[18].mxu0  ;;  %v714_v1 = vpop.f32.mrb[18].mxu1 }
 0x178   :  { %v674_v54 = vpop.f32.mrb[19].mxu0  ;;  %v715_v55 = vpop.f32.mrb[19].mxu1 }
 0x17d   :  { %v816_v7 = vpop.f32.mrb[20].mxu0  ;;  %v857_v13 = vpop.f32.mrb[20].mxu1 }
 0x17e   :  { %v864_v62 = vadd.f32 %v816_v7, %v717_v12  ;;  %v866_v6 = vadd.f32 %v857_v13, %v719_v11  ;;  %v818_v25 = vpop.f32.mrb[21].mxu0  ;;  %v859_v0 = vpop.f32.mrb[21].mxu1 }
 0x17f   :  { %v865_v32 = vadd.f32 %v818_v25, %v718_v60  ;;  %v867_v33 = vadd.f32 %v859_v0, %v720_v61  ;;  %v820_v10 = vpop.f32.mrb[22].mxu0  ;;  %v861_v47 = vpop.f32.mrb[22].mxu1 }
 0x180   :  { %v821_v16 = vpop.f32.mrb[23].mxu0  ;;  %v862_v21 = vpop.f32.mrb[23].mxu1 }
 0x181   :  { %v1313_v16 = vpop.permute.xlu0 %1312 }
 0x185   :  { %v963_v34 = vpop.f32.mrb[24].mxu0  ;;  %v1004_v35 = vpop.f32.mrb[24].mxu1 }
 0x186   :  { %v1011_v36 = vadd.f32 %v963_v34, %v864_v62  ;;  %v1013_v45 = vadd.f32 %v1004_v35, %v866_v6  ;;  %v965_v49 = vpop.f32.mrb[25].mxu0  ;;  %v1006_v50 = vpop.f32.mrb[25].mxu1 }
 0x187   :  { %v1012_v51 = vadd.f32 %v965_v49, %v865_v32  ;;  %v1014_v52 = vadd.f32 %v1006_v50, %v867_v33  ;;  %v967_v22 = vpop.f32.mrb[26].mxu0  ;;  %v1008_v1 = vpop.f32.mrb[26].mxu1 }
 0x188   :  { %v968_v12 = vpop.f32.mrb[27].mxu0  ;;  %v1009_v11 = vpop.f32.mrb[27].mxu1 }
 0x18d   :  { %v1110_v54 = vpop.f32.mrb[28].mxu0  ;;  %v1151_v55 = vpop.f32.mrb[28].mxu1 }
 0x18e   :  { %v1158_v60 = vadd.f32 %v1110_v54, %v1011_v36  ;;  %v1160_v61 = vadd.f32 %v1151_v55, %v1013_v45  ;;  %v1112_v7 = vpop.f32.mrb[29].mxu0  ;;  %v1153_v13 = vpop.f32.mrb[29].mxu1 }
 0x18f   :  { %v1159_v25 = vadd.f32 %v1112_v7, %v1012_v51  ;;  %v1161_v0 = vadd.f32 %v1153_v13, %v1014_v52  ;;  %v1114_v10 = vpop.f32.mrb[30].mxu0  ;;  %v1155_v47 = vpop.f32.mrb[30].mxu1  ;;  %v2405_v13 = vld [vmem:[%s3313_s5] sm:$0xf] }
 0x190   :  { %v1115_v62 = vpop.f32.mrb[31].mxu0  ;;  %v1156_v6 = vpop.f32.mrb[31].mxu1 }
 0x195   :  { %v1257_v21 = vpop.f32.mrb[32].mxu0  ;;  %v1298_v32 = vpop.f32.mrb[32].mxu1 }
 0x196   :  { %v1305_v33 = vadd.f32 %v1257_v21, %v1158_v60  ;;  %v1307_v34 = vadd.f32 %v1298_v32, %v1160_v61  ;;  %v1259_v35 = vpop.f32.mrb[33].mxu0  ;;  %v1300_v49 = vpop.f32.mrb[33].mxu1 }
 0x197   :  { %v1306_v50 = vadd.f32 %v1259_v35, %v1159_v25  ;;  %v1308_v22 = vadd.f32 %v1300_v49, %v1161_v0  ;;  %v1261_v1 = vpop.f32.mrb[34].mxu0  ;;  %v1302_v36 = vpop.f32.mrb[34].mxu1 }
 0x198   :  { %v1315_v45 = vadd.f32 %v1313_v16, %v1305_v33  ;;  %v1317_v12 = vadd.f32 %v1313_v16, %v1307_v34  ;;  %v1262_v11 = vpop.f32.mrb[35].mxu0  ;;  %v1303_v51 = vpop.f32.mrb[35].mxu1 }
 0x199   :  { %v1316_v52 = vadd.f32 %v1313_v16, %v1306_v50  ;;  %v1318_v60 = vadd.f32 %v1313_v16, %v1308_v22 }
 0x19a   :  { %v3019_v54 = vmax.f32 %v1315_v45, 0.0  ;;  %v3021_v55 = vmax.f32 %v1317_v12, 0.0 }
 0x19b   :  { %v3027_v61 = vmax.f32 %v1316_v52, 0.0  ;;  %v3033_v7 = vmax.f32 %v1318_v60, 0.0  ;;  %v2488_v60 = vld [vmem:[%s3314_s4 + $0x2] sm:$0x3] }
 0x19c   :  { %1348 = vrot.lane.b32.xlu0 %v3021_v55, %s2547_s25  ;;  %1344 = vrot.lane.b32.xlu1 %v3019_v54, %s2547_s25 }
 0x1a0   :  { %1323 = vrot.lane.b32.xlu0 %v3019_v54, %s2548_s26  ;;  %1346 = vrot.lane.b32.xlu1 %v3027_v61, %s2547_s25 }
 0x1a4   :  { %1327 = vrot.lane.b32.xlu0 %v3021_v55, %s2548_s26  ;;  %1350 = vrot.lane.b32.xlu1 %v3033_v7, %s2547_s25 }
 0x1a8   :  { %1560 = vrot.lane.b32.xlu0 %v3019_v54, %s2549_s27  ;;  %1325 = vrot.lane.b32.xlu1 %v3027_v61, %s2548_s26 }
 0x1ac   :  { %1564 = vrot.lane.b32.xlu0 %v3021_v55, %s2549_s27  ;;  %1329 = vrot.lane.b32.xlu1 %v3033_v7, %s2548_s26 }
 0x1b0   :  { %1683 = vrot.lane.b32.xlu0 %v3019_v54, %s2550_s28  ;;  %1562 = vrot.lane.b32.xlu1 %v3027_v61, %s2549_s27 }
 0x1b4   :  { %1687 = vrot.lane.b32.xlu0 %v3021_v55, %s2550_s28  ;;  %1566 = vrot.lane.b32.xlu1 %v3033_v7, %s2549_s27 }
 0x1b8   :  { %1913 = vrot.lane.b32.xlu0 %v3019_v54, %s2551_s29  ;;  %1685 = vrot.lane.b32.xlu1 %v3027_v61, %s2550_s28 }
 0x1bc   :  { %1917 = vrot.lane.b32.xlu0 %v3021_v55, %s2551_s29  ;;  %1689 = vrot.lane.b32.xlu1 %v3033_v7, %s2550_s28 }
 0x1c0   :  { %2036 = vrot.lane.b32.xlu0 %v3019_v54, %s2552_s30  ;;  %1915 = vrot.lane.b32.xlu1 %v3027_v61, %s2551_s29 }
 0x1c4   :  { %2040 = vrot.lane.b32.xlu0 %v3021_v55, %s2552_s30  ;;  %1919 = vrot.lane.b32.xlu1 %v3033_v7, %s2551_s29 }
 0x1c8   :  { %2159 = vrot.lane.b32.xlu0 %v3019_v54, %s2553_s7  ;;  %2038 = vrot.lane.b32.xlu1 %v3027_v61, %s2552_s30 }
 0x1cc   :  { %2163 = vrot.lane.b32.xlu0 %v3021_v55, %s2553_s7  ;;  %2042 = vrot.lane.b32.xlu1 %v3033_v7, %s2552_s30 }
 0x1d0   :  { %2282 = vrot.lane.b32.xlu0 %v3019_v54, %s2554_s8  ;;  %2161 = vrot.lane.b32.xlu1 %v3027_v61, %s2553_s7 }
 0x1d4   :  { %2286 = vrot.lane.b32.xlu0 %v3021_v55, %s2554_s8  ;;  %2165 = vrot.lane.b32.xlu1 %v3033_v7, %s2553_s7 }
 0x1d8   :  { %2408 = vperm.xlu0 %2541, %v2405_v13   ;;  %2284 = vrot.lane.b32.xlu1 %v3027_v61, %s2554_s8 }
 0x1dc   :  { %2288 = vrot.lane.b32.xlu1 %v3033_v7, %s2554_s8 }
 0x20e   :  { %v1349_v25 = vpop.permute.xlu0 %1348  ;;  %v1345_v0 = vpop.permute.xlu1 %1344 }
 0x212   :  { %v1324_v10 = vpop.permute.xlu0 %1323  ;;  %v1347_v47 = vpop.permute.xlu1 %1346 }
 0x213   :  { %v1353_v62 = vsel %vm86_vm0, %v1347_v47, %v1349_v25  ;;  %v1354_v6 = vsel %vm86_vm0, %v1345_v0, %v1347_v47 }
 0x214   :  { %v1357_v16 = vmul.f32 %v1354_v6, %v2702_v19  ;;  %v1358_v21 = vmul.f32 %v1353_v62, %v2699_v18 }
 0x216   :  { %v1361_v32 = vpack.c.bf16 %v1357_v16, %v1357_v16  ;;  %v1328_v33 = vpop.permute.xlu0 %1327  ;;  %v1351_v34 = vpop.permute.xlu1 %1350  ;;  %v1362_v50 = vpack.c.bf16 %v1358_v21, %v1358_v21 }
 0x217   :  { %v1352_v35 = vsel %vm86_vm0, %v1349_v25, %v1351_v34  ;;  %v1355_v49 = vsel %vm86_vm0, %v1351_v34, %v1345_v0 }
 0x218   :  { %v1356_v22 = vmul.f32 %v1355_v49, %v2696_v17  ;;  %v1359_v1 = vmul.f32 %v1352_v35, %v2705_v20  ;;  %2489 = vmatprep.subr.msk.bf16.mxu0 %vm128_vm2, %v1361_v32  ;;  %v1376_v20 = vsel %vm128_vm2, %v1362_v50, 0  ;;  %v1343_v50 = vld [vmem:[%s3314_s4] sm:$0x3] }
 0x21a   :  { %v1360_v36 = vpack.c.bf16 %v1356_v22, %v1356_v22  ;;  %v1363_v19 = vpack.c.bf16 %v1359_v1, %v1359_v1  ;;  %v1561_v45 = vpop.permute.xlu0 %1560  ;;  %v1326_v18 = vpop.permute.xlu1 %1325 }
 0x21b   :  { %v1332_v12 = vsel %vm42_vm1, %v1326_v18, %v1328_v33  ;;  %v1333_v11 = vsel %vm42_vm1, %v1324_v10, %v1326_v18 }
 0x21c   :  { %v1336_v51 = vmul.f32 %v1333_v11, %v2709_v23  ;;  %v1337_v52 = vmul.f32 %v1332_v12, %v2729_v40  ;;  %2491 = vmatprep.subr.msk.bf16.mxu1 %vm128_vm2, %v1363_v19  ;;  %v1370_v17 = vsel %vm128_vm2, %v1360_v36, 0 }
 0x21d   :  { %1382 = vmatpush1.bf16.msra.mxu0 %v1370_v17  ;;  %1423 = vmatpush1.bf16.msra.mxu1 %v1376_v20 }
 0x21e   :  { %v1340_v13 = vpack.c.bf16 %v1336_v51, %v1336_v51  ;;  %v1565_v25 = vpop.permute.xlu0 %1564  ;;  %v1330_v0 = vpop.permute.xlu1 %1329  ;;  %v1341_v47 = vpack.c.bf16 %v1337_v52, %v1337_v52 }
 0x21f   :  { %v1331_v23 = vsel %vm42_vm1, %v1328_v33, %v1330_v0  ;;  %v1334_v40 = vsel %vm42_vm1, %v1330_v0, %v1324_v10 }
 0x220   :  { %v1335_v62 = vmul.f32 %v1334_v40, %v2726_v39  ;;  %v1338_v6 = vmul.f32 %v1331_v23, %v2737_v44  ;;  %2490 = vmatmul.mubr.msk.bf16.vlgmr.msra.gmra.mrb[36].mxu0 %vm124_vm3, %v2488_v60  ;;  %2492 = vmatmul.mubr.msk.bf16.vlgmr.msra.gmra.mrb[36].mxu1 %vm124_vm3, %v2488_v60  ;;  %v1473_v49 = vsel %vm128_vm2, %v1341_v47, 0 }
 0x221   :  { %2493 = vmatprep.subr.msk.bf16.mxu0 %vm128_vm2, %v1340_v13  ;;  %1510 = vmatprep.mubr.bf16.mxu0 %v2546_v2 }
 0x222   :  { %v1339_v16 = vpack.c.bf16 %v1335_v62, %v1335_v62  ;;  %v1342_v21 = vpack.c.bf16 %v1338_v6, %v1338_v6  ;;  %v1684_v32 = vpop.permute.xlu0 %1683  ;;  %v1563_v33 = vpop.permute.xlu1 %1562  ;;  %1551 = vmatprep.mubr.bf16.mxu1 %v2546_v2 }
 0x223   :  { %v1569_v10 = vsel %vm328_vm4, %v1563_v33, %v1565_v25  ;;  %v1570_v39 = vsel %vm328_vm4, %v1561_v45, %v1563_v33 }
 0x224   :  { %v1573_v44 = vmul.f32 %v1570_v39, %v2752_v53  ;;  %v1574_v34 = vmul.f32 %v1569_v10, %v2769_v5  ;;  %2495 = vmatprep.subr.msk.bf16.mxu1 %vm128_vm2, %v1342_v21  ;;  %v1467_v35 = vsel %vm128_vm2, %v1339_v16, 0  ;;  %v1807_v39 = vpack.c.bf16 %v3027_v61, %v3027_v61  ;;  %v2502_v61 = vld [vmem:[%s3314_s4 + $0x6] sm:$0x3] }
 0x225   :  { %1479 = vmatpush1.bf16.msra.mxu0 %v1467_v35  ;;  %1520 = vmatpush1.bf16.msra.mxu1 %v1473_v49 }
 0x226   :  { %v1577_v22 = vpack.c.bf16 %v1573_v44, %v1573_v44  ;;  %v1688_v1 = vpop.permute.xlu0 %1687  ;;  %v1567_v36 = vpop.permute.xlu1 %1566  ;;  %v1578_v19 = vpack.c.bf16 %v1574_v34, %v1574_v34  ;;  %v1808_v44 = vpack.c.bf16 %v3021_v55, %v3021_v55 }
 0x227   :  { %v1568_v53 = vsel %vm328_vm4, %v1565_v25, %v1567_v36  ;;  %v1571_v5 = vsel %vm328_vm4, %v1567_v36, %v1561_v45  ;;  %v2497_v25 = vld [vmem:[%s3314_s4 + $0x4] sm:$0x3] }
 0x228   :  { %v1572_v18 = vmul.f32 %v1571_v5, %v2766_v63  ;;  %v1575_v12 = vmul.f32 %v1568_v53, %v2776_v14  ;;  %2494 = vmatmul.mubr.msk.bf16.vlgmr.msra.gmra.mrb[40].mxu0 %vm124_vm3, %v1343_v50  ;;  %2496 = vmatmul.mubr.msk.bf16.vlgmr.msra.gmra.mrb[40].mxu1 %vm124_vm3, %v1343_v50  ;;  %v1592_v13 = vsel %vm128_vm2, %v1578_v19, 0  ;;  %v1822_v19 = vsel %vm128_vm2, %v1808_v44, 0 }
 0x229   :  { %2498 = vmatprep.subr.msk.bf16.mxu0 %vm128_vm2, %v1577_v22  ;;  %1629 = vmatprep.mubr.bf16.mxu0 %v2546_v2 }
 0x22a   :  { %v1576_v11 = vpack.c.bf16 %v1572_v18, %v1572_v18  ;;  %v1579_v51 = vpack.c.bf16 %v1575_v12, %v1575_v12  ;;  %v1914_v52 = vpop.permute.xlu0 %1913  ;;  %v1686_v17 = vpop.permute.xlu1 %1685  ;;  %1670 = vmatprep.mubr.bf16.mxu1 %v2546_v2 }
 0x22b   :  { %v1692_v45 = vsel %vm475_vm5, %v1686_v17, %v1688_v1  ;;  %v1693_v63 = vsel %vm475_vm5, %v1684_v32, %v1686_v17  ;;  %v2507_v17 = vld [vmem:[%s3314_s4 + $0x8] sm:$0x3] }
 0x22c   :  { %v1696_v14 = vmul.f32 %v1693_v63, %v2791_v28  ;;  %v1697_v20 = vmul.f32 %v1692_v45, %v2808_v41  ;;  %2500 = vmatprep.subr.msk.bf16.mxu1 %vm128_vm2, %v1579_v51  ;;  %v1586_v60 = vsel %vm128_vm2, %v1576_v11, 0 }
 0x22d   :  { %1598 = vmatpush1.bf16.msra.mxu0 %v1586_v60  ;;  %1639 = vmatpush1.bf16.msra.mxu1 %v1592_v13 }
 0x22e   :  { %v1700_v0 = vpack.c.bf16 %v1696_v14, %v1696_v14  ;;  %v1918_v23 = vpop.permute.xlu0 %1917  ;;  %v1690_v40 = vpop.permute.xlu1 %1689  ;;  %v1701_v47 = vpack.c.bf16 %v1697_v20, %v1697_v20 }
 0x22f   :  { %v1691_v28 = vsel %vm475_vm5, %v1688_v1, %v1690_v40  ;;  %v1694_v41 = vsel %vm475_vm5, %v1690_v40, %v1684_v32  ;;  %v1806_v32 = vpack.c.bf16 %v3019_v54, %v3019_v54 }
 0x230   :  { %v1695_v62 = vmul.f32 %v1694_v41, %v2805_v38  ;;  %v1698_v6 = vmul.f32 %v1691_v28, %v2815_v46  ;;  %2499 = vmatmul.mubr.msk.bf16.vlgmr.msra.gmra.mrb[44].mxu0 %vm124_vm3, %v2497_v25  ;;  %2501 = vmatmul.mubr.msk.bf16.vlgmr.msra.gmra.mrb[44].mxu1 %vm124_vm3, %v2497_v25  ;;  %v1809_v46 = vpack.c.bf16 %v3033_v7, %v3033_v7  ;;  %v1715_v49 = vsel %vm128_vm2, %v1701_v47, 0 }
 0x231   :  { %2503 = vmatprep.subr.msk.bf16.mxu0 %vm128_vm2, %v1700_v0  ;;  %1752 = vmatprep.mubr.bf16.mxu0 %v2546_v2  ;;  %v1816_v1 = vsel %vm128_vm2, %v1806_v32, 0 }
 0x232   :  { %v1699_v16 = vpack.c.bf16 %v1695_v62, %v1695_v62  ;;  %v1702_v21 = vpack.c.bf16 %v1698_v6, %v1698_v6  ;;  %v2037_v33 = vpop.permute.xlu0 %2036  ;;  %v1916_v10 = vpop.permute.xlu1 %1915  ;;  %1793 = vmatprep.mubr.bf16.mxu1 %v2546_v2  ;;  %v2512_v6 = vld [vmem:[%s3314_s4 + $0xa] sm:$0x3] }
 0x233   :  { %v1922_v38 = vsel %vm729_vm6, %v1916_v10, %v1918_v23  ;;  %v1923_v34 = vsel %vm729_vm6, %v1914_v52, %v1916_v10 }
 0x234   :  { %v1926_v35 = vmul.f32 %v1922_v38, %v2858_v26  ;;  %2505 = vmatprep.subr.msk.bf16.mxu1 %vm128_vm2, %v1702_v21  ;;  %v1709_v54 = vsel %vm128_vm2, %v1699_v16, 0  ;;  %v1925_v26 = vmul.f32 %v1923_v34, %v2830_v56 }
 0x235   :  { %1721 = vmatpush1.bf16.msra.mxu0 %v1709_v54  ;;  %1762 = vmatpush1.bf16.msra.mxu1 %v1715_v49 }
 0x236   :  { %v2041_v7 = vpop.permute.xlu0 %2040  ;;  %2510 = vmatprep.subr.msk.bf16.mxu1 %vm128_vm2, %v1809_v46  ;;  %v1920_v55 = vpop.permute.xlu1 %1919  ;;  %2508 = vmatprep.subr.msk.bf16.mxu0 %vm128_vm2, %v1807_v39  ;;  %v1930_v36 = vpack.c.bf16 %v1926_v35, %v1926_v35  ;;  %v1929_v11 = vpack.c.bf16 %v1925_v26, %v1925_v26 }
 0x237   :  { %v1921_v50 = vsel %vm729_vm6, %v1918_v23, %v1920_v55  ;;  %v1924_v22 = vsel %vm729_vm6, %v1920_v55, %v1914_v52 }
 0x238   :  { %v1927_v53 = vmul.f32 %v1921_v50, %v2861_v27  ;;  %v1928_v5 = vmul.f32 %v1924_v22, %v2852_v24  ;;  %2504 = vmatmul.mubr.msk.bf16.vlgmr.msra.gmra.mrb[48].mxu0 %vm124_vm3, %v2502_v61  ;;  %2506 = vmatmul.mubr.msk.bf16.vlgmr.msra.gmra.mrb[48].mxu1 %vm124_vm3, %v2502_v61  ;;  %v2517_v61 = vld [vmem:[%s3314_s4 + $0xc] sm:$0x3] }
 0x239   :  { %1828 = vmatpush1.bf16.msra.mxu0 %v1816_v1  ;;  %1869 = vmatpush1.bf16.msra.mxu1 %v1822_v19 }
 0x23a   :  { %v1932_v56 = vpack.c.bf16 %v1928_v5, %v1928_v5  ;;  %v2160_v18 = vpop.permute.xlu0 %2159  ;;  %v2039_v12 = vpop.permute.xlu1 %2038  ;;  %2513 = vmatprep.subr.msk.bf16.mxu0 %vm128_vm2, %v1930_v36  ;;  %1859 = vmatprep.mubr.bf16.mxu0 %v2546_v2  ;;  %v1931_v24 = vpack.c.bf16 %v1927_v53, %v1927_v53 }
 0x23b   :  { %v2045_v27 = vsel %vm876_vm7, %v2039_v12, %v2041_v7  ;;  %1900 = vmatprep.mubr.bf16.mxu1 %v2546_v2  ;;  %v2046_v52 = vsel %vm876_vm7, %v2037_v33, %v2039_v12 }
 0x23c   :  { %v2049_v51 = vmul.f32 %v2045_v27, %v2899_v58  ;;  %2515 = vmatprep.subr.msk.bf16.mxu1 %vm128_vm2, %v1932_v56  ;;  %v1939_v58 = vsel %vm128_vm2, %v1929_v11, 0  ;;  %v2048_v13 = vmul.f32 %v2046_v52, %v2887_v48  ;;  %v1945_v23 = vsel %vm128_vm2, %v1931_v24, 0  ;;  %v2527_v56 = vld [vmem:[%s3314_s4 + $0x10] sm:$0x3] }
 0x23e   :  { %v2053_v45 = vpack.c.bf16 %v2049_v51, %v2049_v51  ;;  %v2164_v63 = vpop.permute.xlu0 %2163  ;;  %v2043_v14 = vpop.permute.xlu1 %2042 }
 0x23f   :  { %v2044_v20 = vsel %vm876_vm7, %v2041_v7, %v2043_v14  ;;  %v2047_v60 = vsel %vm876_vm7, %v2043_v14, %v2037_v33 }
 0x240   :  { %v2050_v25 = vmul.f32 %v2044_v20, %v2902_v59  ;;  %v2051_v0 = vmul.f32 %v2047_v60, %v2896_v57  ;;  %2509 = vmatmul.mubr.msk.bf16.vlgmr.msra.gmra.mrb[52].mxu0 %vm124_vm3, %v2507_v17  ;;  %2511 = vmatmul.mubr.msk.bf16.vlgmr.msra.gmra.mrb[52].mxu1 %vm124_vm3, %v2507_v17  ;;  %v2052_v57 = vpack.c.bf16 %v2048_v13, %v2048_v13 }
 0x241   :  { %1951 = vmatpush1.bf16.msra.mxu0 %v1939_v58  ;;  %1992 = vmatpush1.bf16.msra.mxu1 %v1945_v23 }
 0x242   :  { %v2055_v40 = vpack.c.bf16 %v2051_v0, %v2051_v0  ;;  %2518 = vmatprep.subr.msk.bf16.mxu0 %vm128_vm2, %v2053_v45  ;;  %v2162_v28 = vpop.permute.xlu1 %2161  ;;  %1982 = vmatprep.mubr.bf16.mxu0 %v2546_v2  ;;  %v2054_v59 = vpack.c.bf16 %v2050_v25, %v2050_v25  ;;  %v2283_v41 = vpop.permute.xlu0 %2282  ;;  %v2062_v46 = vsel %vm128_vm2, %v2052_v57, 0 }
 0x243   :  { %v2168_v48 = vsel %vm1023_vm8, %v2162_v28, %v2164_v63  ;;  %2023 = vmatprep.mubr.bf16.mxu1 %v2546_v2  ;;  %v2169_v47 = vsel %vm1023_vm8, %v2160_v18, %v2162_v28 }
 0x244   :  { %v2172_v62 = vmul.f32 %v2168_v48, %v2938_v42  ;;  %2520 = vmatprep.subr.msk.bf16.mxu1 %vm128_vm2, %v2055_v40  ;;  %v2171_v33 = vmul.f32 %v2169_v47, %v2926_v30  ;;  %v2068_v39 = vsel %vm128_vm2, %v2054_v59, 0 }
 0x246   :  { %v2176_v16 = vpack.c.bf16 %v2172_v62, %v2172_v62  ;;  %v2166_v21 = vpop.permute.xlu1 %2165  ;;  %v2287_v30 = vpop.permute.xlu0 %2286 }
 0x247   :  { %v2167_v10 = vsel %vm1023_vm8, %v2164_v63, %v2166_v21  ;;  %v2170_v32 = vsel %vm1023_vm8, %v2166_v21, %v2160_v18 }
 0x248   :  { %v2173_v38 = vmul.f32 %v2167_v10, %v2941_v43  ;;  %v2174_v42 = vmul.f32 %v2170_v32, %v2935_v37  ;;  %2514 = vmatmul.mubr.msk.bf16.vlgmr.msra.gmra.mrb[56].mxu0 %vm124_vm3, %v2512_v6  ;;  %2516 = vmatmul.mubr.msk.bf16.vlgmr.msra.gmra.mrb[56].mxu1 %vm124_vm3, %v2512_v6  ;;  %v2175_v43 = vpack.c.bf16 %v2171_v33, %v2171_v33 }
 0x249   :  { %2074 = vmatpush1.bf16.msra.mxu0 %v2062_v46  ;;  %2115 = vmatpush1.bf16.msra.mxu1 %v2068_v39 }
 0x24a   :  { %v2178_v44 = vpack.c.bf16 %v2174_v42, %v2174_v42  ;;  %2523 = vmatprep.subr.msk.bf16.mxu0 %vm128_vm2, %v2176_v16  ;;  %v2285_v34 = vpop.permute.xlu1 %2284  ;;  %2105 = vmatprep.mubr.bf16.mxu0 %v2546_v2  ;;  %v2177_v35 = vpack.c.bf16 %v2173_v38, %v2173_v38  ;;  %v2185_v22 = vsel %vm128_vm2, %v2175_v43, 0 }
 0x24b   :  { %v2291_v37 = vsel %vm1170_vm9, %v2285_v34, %v2287_v30  ;;  %2146 = vmatprep.mubr.bf16.mxu1 %v2546_v2  ;;  %v2292_v49 = vsel %vm1170_vm9, %v2283_v41, %v2285_v34 }
 0x24c   :  { %v2295_v54 = vmul.f32 %v2291_v37, %v2977_v9  ;;  %2525 = vmatprep.subr.msk.bf16.mxu1 %vm128_vm2, %v2178_v44  ;;  %v2294_v9 = vmul.f32 %v2292_v49, %v2965_v15  ;;  %v2191_v53 = vsel %vm128_vm2, %v2177_v35, 0 }
 0x24e   :  { %v2299_v7 = vpack.c.bf16 %v2295_v54, %v2295_v54  ;;  %v2289_v55 = vpop.permute.xlu1 %2288  ;;  %v2298_v8 = vpack.c.bf16 %v2294_v9, %v2294_v9 }
 0x24f   :  { %v2290_v26 = vsel %vm1170_vm9, %v2287_v30, %v2289_v55  ;;  %v2293_v50 = vsel %vm1170_vm9, %v2289_v55, %v2283_v41 }
 0x250   :  { %v2296_v1 = vmul.f32 %v2290_v26, %v2980_v31  ;;  %v2297_v36 = vmul.f32 %v2293_v50, %v2974_v29  ;;  %2519 = vmatmul.mubr.msk.bf16.vlgmr.msra.gmra.mrb[60].mxu0 %vm124_vm3, %v2517_v61  ;;  %2521 = vmatmul.mubr.msk.bf16.vlgmr.msra.gmra.mrb[60].mxu1 %vm124_vm3, %v2517_v61  ;;  %v2522_v29 = vld [vmem:[%s3314_s4 + $0xe] sm:$0x3]  ;;  %v2308_v31 = vsel %vm128_vm2, %v2298_v8, 0 }
 0x251   :  { %2197 = vmatpush1.bf16.msra.mxu0 %v2185_v22  ;;  %2238 = vmatpush1.bf16.msra.mxu1 %v2191_v53 }
 0x252   :  { %v2301_v5 = vpack.c.bf16 %v2297_v36, %v2297_v36  ;;  %2528 = vmatprep.subr.msk.bf16.mxu0 %vm128_vm2, %v2299_v7  ;;  %2228 = vmatprep.mubr.bf16.mxu0 %v2546_v2  ;;  %v2300_v15 = vpack.c.bf16 %v2296_v1, %v2296_v1 }
 0x253   :  { %2269 = vmatprep.mubr.bf16.mxu1 %v2546_v2 }
 0x254   :  { %2530 = vmatprep.subr.msk.bf16.mxu1 %vm128_vm2, %v2301_v5  ;;  %v2314_v19 = vsel %vm128_vm2, %v2300_v15, 0 }
 0x258   :  { %2524 = vmatmul.mubr.msk.bf16.vlgmr.msra.gmra.mrb[64].mxu0 %vm124_vm3, %v2522_v29  ;;  %2526 = vmatmul.mubr.msk.bf16.vlgmr.msra.gmra.mrb[64].mxu1 %vm124_vm3, %v2522_v29 }
 0x259   :  { %2320 = vmatpush1.bf16.msra.mxu0 %v2308_v31  ;;  %2361 = vmatpush1.bf16.msra.mxu1 %v2314_v19 }
 0x25a   :  { %2351 = vmatprep.mubr.bf16.mxu0 %v2546_v2  ;;  %2392 = vmatprep.mubr.bf16.mxu1 %v2546_v2 }
 0x260   :  { %2529 = vmatmul.mubr.msk.bf16.vlgmr.msra.gmra.mrb[68].mxu0 %vm124_vm3, %v2527_v56  ;;  %2531 = vmatmul.mubr.msk.bf16.vlgmr.msra.gmra.mrb[68].mxu1 %vm124_vm3, %v2527_v56 }
 0x2f3   :  { %v1415_v18 = vpop.f32.mrb[36].mxu0  ;;  %v1456_v12 = vpop.f32.mrb[36].mxu1 }
 0x2f4   :  { %v1417_v11 = vpop.f32.mrb[37].mxu0  ;;  %v1458_v27 = vpop.f32.mrb[37].mxu1 }
 0x2f5   :  { %v1419_v24 = vpop.f32.mrb[38].mxu0  ;;  %v1460_v51 = vpop.f32.mrb[38].mxu1 }
 0x2f6   :  { %v1420_v52 = vpop.f32.mrb[39].mxu0  ;;  %v1461_v17 = vpop.f32.mrb[39].mxu1 }
 0x2fb   :  { %v1512_v45 = vpop.f32.mrb[40].mxu0  ;;  %v1553_v63 = vpop.f32.mrb[40].mxu1 }
 0x2fc   :  { %v1513_v14 = vadd.f32 %v1512_v45, %v1415_v18  ;;  %v1554_v2 = vadd.f32 %v1553_v63, %v1456_v12  ;;  %v1514_v20 = vpop.f32.mrb[41].mxu0  ;;  %v1555_v60 = vpop.f32.mrb[41].mxu1 }
 0x2fd   :  { %v1515_v58 = vadd.f32 %v1514_v20, %v1417_v11  ;;  %v1556_v13 = vadd.f32 %v1555_v60, %v1458_v27  ;;  %v1516_v25 = vpop.f32.mrb[42].mxu0  ;;  %v1557_v0 = vpop.f32.mrb[42].mxu1 }
 0x2fe   :  { %v1517_v23 = vpop.f32.mrb[43].mxu0  ;;  %v1558_v40 = vpop.f32.mrb[43].mxu1 }
 0x303   :  { %v1631_v28 = vpop.f32.mrb[44].mxu0  ;;  %v1672_v48 = vpop.f32.mrb[44].mxu1 }
 0x304   :  { %v1679_v57 = vadd.f32 %v1631_v28, %v1513_v14  ;;  %v1681_v59 = vadd.f32 %v1672_v48, %v1554_v2  ;;  %v1633_v41 = vpop.f32.mrb[45].mxu0  ;;  %v1674_v47 = vpop.f32.mrb[45].mxu1 }
 0x305   :  { %v1680_v62 = vadd.f32 %v1633_v41, %v1515_v58  ;;  %v1682_v6 = vadd.f32 %v1674_v47, %v1556_v13  ;;  %v1635_v16 = vpop.f32.mrb[46].mxu0  ;;  %v1676_v21 = vpop.f32.mrb[46].mxu1 }
 0x306   :  { %v1636_v33 = vpop.f32.mrb[47].mxu0  ;;  %v1677_v10 = vpop.f32.mrb[47].mxu1 }
 0x307   :  { %v2409_v33 = vpop.permute.xlu0 %2408 }
 0x30b   :  { %v1754_v32 = vpop.f32.mrb[48].mxu0  ;;  %v1795_v38 = vpop.f32.mrb[48].mxu1 }
 0x30c   :  { %v1802_v42 = vadd.f32 %v1754_v32, %v1679_v57  ;;  %v1804_v46 = vadd.f32 %v1795_v38, %v1681_v59  ;;  %v1756_v39 = vpop.f32.mrb[49].mxu0  ;;  %v1797_v30 = vpop.f32.mrb[49].mxu1 }
 0x30d   :  { %v1803_v44 = vadd.f32 %v1756_v39, %v1680_v62  ;;  %v1805_v34 = vadd.f32 %v1797_v30, %v1682_v6  ;;  %v1758_v43 = vpop.f32.mrb[50].mxu0  ;;  %v1799_v37 = vpop.f32.mrb[50].mxu1 }
 0x30e   :  { %v1759_v35 = vpop.f32.mrb[51].mxu0  ;;  %v1800_v54 = vpop.f32.mrb[51].mxu1 }
 0x313   :  { %v1861_v49 = vpop.f32.mrb[52].mxu0  ;;  %v1902_v61 = vpop.f32.mrb[52].mxu1 }
 0x314   :  { %v1909_v7 = vadd.f32 %v1861_v49, %v1802_v42  ;;  %v1911_v55 = vadd.f32 %v1902_v61, %v1804_v46  ;;  %v1863_v26 = vpop.f32.mrb[53].mxu0  ;;  %v1904_v50 = vpop.f32.mrb[53].mxu1 }
 0x315   :  { %v1910_v22 = vadd.f32 %v1863_v26, %v1803_v44  ;;  %v1912_v9 = vadd.f32 %v1904_v50, %v1805_v34  ;;  %v1865_v1 = vpop.f32.mrb[54].mxu0  ;;  %v1906_v36 = vpop.f32.mrb[54].mxu1  ;;  %v2545_v50 = vld [vmem:[%s3309_s0 + $0x8] sm:$0xff] }
 0x316   :  { %v1866_v53 = vpop.f32.mrb[55].mxu0  ;;  %v1907_v5 = vpop.f32.mrb[55].mxu1 }
 0x31b   :  { %v1984_v8 = vpop.f32.mrb[56].mxu0  ;;  %v2025_v15 = vpop.f32.mrb[56].mxu1 }
 0x31c   :  { %v2032_v29 = vadd.f32 %v1984_v8, %v1909_v7  ;;  %v2034_v31 = vadd.f32 %v2025_v15, %v1911_v55  ;;  %v1986_v19 = vpop.f32.mrb[57].mxu0  ;;  %v2027_v56 = vpop.f32.mrb[57].mxu1  ;;  %v2544_v55 = vld [vmem:[%s3309_s0] sm:$0xff] }
 0x31d   :  { %v2033_v18 = vadd.f32 %v1986_v19, %v1910_v22  ;;  %v2035_v12 = vadd.f32 %v2027_v56, %v1912_v9  ;;  %v1988_v11 = vpop.f32.mrb[58].mxu0  ;;  %v2029_v27 = vpop.f32.mrb[58].mxu1 }
 0x31e   :  { %v1989_v24 = vpop.f32.mrb[59].mxu0  ;;  %v2030_v51 = vpop.f32.mrb[59].mxu1 }
 0x323   :  { %v2107_v52 = vpop.f32.mrb[60].mxu0  ;;  %v2148_v17 = vpop.f32.mrb[60].mxu1 }
 0x324   :  { %v2155_v45 = vadd.f32 %v2107_v52, %v2032_v29  ;;  %v2157_v63 = vadd.f32 %v2148_v17, %v2034_v31  ;;  %v2109_v14 = vpop.f32.mrb[61].mxu0  ;;  %v2150_v2 = vpop.f32.mrb[61].mxu1 }
 0x325   :  { %v2156_v20 = vadd.f32 %v2109_v14, %v2033_v18  ;;  %v2158_v60 = vadd.f32 %v2150_v2, %v2035_v12  ;;  %v2111_v58 = vpop.f32.mrb[62].mxu0  ;;  %v2152_v13 = vpop.f32.mrb[62].mxu1 }
 0x326   :  { %v2112_v25 = vpop.f32.mrb[63].mxu0  ;;  %v2153_v0 = vpop.f32.mrb[63].mxu1 }
 0x32b   :  { %v2230_v23 = vpop.f32.mrb[64].mxu0  ;;  %v2271_v40 = vpop.f32.mrb[64].mxu1 }
 0x32c   :  { %v2278_v28 = vadd.f32 %v2230_v23, %v2155_v45  ;;  %v2280_v48 = vadd.f32 %v2271_v40, %v2157_v63  ;;  %v2232_v57 = vpop.f32.mrb[65].mxu0  ;;  %v2273_v59 = vpop.f32.mrb[65].mxu1 }
 0x32d   :  { %v2279_v41 = vadd.f32 %v2232_v57, %v2156_v20  ;;  %v2281_v47 = vadd.f32 %v2273_v59, %v2158_v60  ;;  %v2234_v62 = vpop.f32.mrb[66].mxu0  ;;  %v2275_v6 = vpop.f32.mrb[66].mxu1 }
 0x32e   :  { %v2235_v16 = vpop.f32.mrb[67].mxu0  ;;  %v2276_v21 = vpop.f32.mrb[67].mxu1 }
 0x333   :  { %v2353_v10 = vpop.f32.mrb[68].mxu0  ;;  %v2394_v32 = vpop.f32.mrb[68].mxu1 }
 0x334   :  { %v2401_v38 = vadd.f32 %v2353_v10, %v2278_v28  ;;  %v2403_v42 = vadd.f32 %v2394_v32, %v2280_v48  ;;  %v2355_v46 = vpop.f32.mrb[69].mxu0  ;;  %v2396_v39 = vpop.f32.mrb[69].mxu1 }
 0x335   :  { %v2402_v30 = vadd.f32 %v2355_v46, %v2279_v41  ;;  %v2404_v44 = vadd.f32 %v2396_v39, %v2281_v47  ;;  %v2357_v34 = vpop.f32.mrb[70].mxu0  ;;  %v2398_v43 = vpop.f32.mrb[70].mxu1 }
 0x336   :  { %v2411_v37 = vadd.f32 %v2409_v33, %v2401_v38  ;;  %v2413_v35 = vadd.f32 %v2409_v33, %v2403_v42  ;;  %v2358_v54 = vpop.f32.mrb[71].mxu0  ;;  %v2399_v49 = vpop.f32.mrb[71].mxu1 }
 0x337   :  { %v2412_v61 = vadd.f32 %v2409_v33, %v2402_v30  ;;  %v2414_v7 = vadd.f32 %v2409_v33, %v2404_v44 }
 0x338   :  { %v2415_v26 = vadd.f32 %v2544_v55, %v2411_v37  ;;  %v2417_v22 = vadd.f32 %v2545_v50, %v2413_v35 }
 0x339   :  { %v2416_v9 = vadd.f32 %v2412_v61, %v2612_v4  ;;  %v2418_v1 = vadd.f32 %v2414_v7, %v2608_v3 }
 0x33a   :  { %v2419_v36 = vmax.f32 %v2415_v26, 0.0  ;;  %v2421_v53 = vmax.f32 %v2417_v22, 0.0 }
 0x33b   :  { %v2420_v5 = vmax.f32 %v2416_v9, 0.0  ;;  %v2422_v8 = vmax.f32 %v2418_v1, 0.0 }
 0x33d   :  { %v2427_v15 = vcombine.low %v2419_v36, %v2420_v5  ;;  %v2428_v29 = vcombine.low %v2421_v53, %v2422_v8 }
 0x33f   :  { %2431 = vst [vmem:[%s3315_s6] sm:$0xff] %v2427_v15  ;;  %2432 = vst [vmem:[%s3315_s6 + $0x8] sm:$0xff] %v2428_v29 }

</bundles_post_ra>
